<compile_context>
chip_gen: v7x
topology: tpu7x:2x2x1
jax: 0.10.0
libtpu: 0.0.40
codegen_flags: <defaults>
</compile_context>

<pallas_src>
import math

import jax
import jax.numpy as jnp
from jax import lax
from jax.experimental import pallas as pl
from jax.experimental.pallas import tpu as pltpu


def _round_up(x, m):
    return ((x + m - 1) // m) * m


# ----------------------------- fused Net kernel ------------------------------
def _make_net_kernel(T, Bp, H, num_layers, unroll_time):
    """Kernel ref layout: x, (w_ih_t, w_hh_t, b) * L, fc_w_t, fc_b,
    out, zx_scr, hseq_scr."""

    def kernel(*refs):
        x_ref = refs[0]
        layer_refs = refs[1:1 + 3 * num_layers]
        fcw_ref, fcb_ref, out_ref, zx_scr, hseq_scr = refs[1 + 3 * num_layers:]

        h = None
        for l in range(num_layers):
            wih_ref, whh_ref, b_ref = layer_refs[3 * l:3 * l + 3]
            mm_dtype = wih_ref.dtype
            if l == 0:
                seq = x_ref[...]                          # (T*Bp, D)
            else:
                seq = hseq_scr[...].astype(mm_dtype)      # (T*Bp, H)

            # Hoisted input projection: one batched GEMM for all timesteps.
            zx_scr[...] = (
                jnp.dot(seq, wih_ref[...], preferred_element_type=jnp.float32)
                + b_ref[...])

            whh = whh_ref[...]                            # (H, 4H)
            write_hseq = l < num_layers - 1               # last layer: only h_{T-1} needed

            def step(t, carry, whh=whh, write_hseq=write_hseq):
                h, c = carry
                r = t * Bp if isinstance(t, int) else pl.multiple_of(t * Bp, Bp)
                # Only the recurrent matmul sits on the serial chain.
                z = zx_scr[pl.ds(r, Bp), :] + jnp.dot(
                    h.astype(whh.dtype), whh, preferred_element_type=jnp.float32)
                # PyTorch gate order: i, f, g, o — element-wise math in f32.
                i = jax.nn.sigmoid(z[:, 0 * H:1 * H])
                f = jax.nn.sigmoid(z[:, 1 * H:2 * H])
                g = jnp.tanh(z[:, 2 * H:3 * H])
                o = jax.nn.sigmoid(z[:, 3 * H:4 * H])
                c = f * c + i * g
                h = o * jnp.tanh(c)
                if write_hseq:
                    hseq_scr[pl.ds(r, Bp), :] = h
                return h, c

            carry = (jnp.zeros((Bp, H), jnp.float32),
                     jnp.zeros((Bp, H), jnp.float32))
            if unroll_time:                               # small T: full unroll (LLO visibility)
                for t in range(T):
                    carry = step(t, carry)
            else:                                         # large T: in-kernel fori_loop
                carry = lax.fori_loop(0, T, step, carry)
            h = carry[0]                                  # hidden state at t = T-1

        # Fused FC head on the final hidden state (x[:, -1] in the PyTorch model).
        out_ref[...] = (
            jnp.dot(h.astype(fcw_ref.dtype), fcw_ref[...],
                    preferred_element_type=jnp.float32)
            + fcb_ref[...]).astype(out_ref.dtype)

    return kernel


# ------------------------------ param preparation ----------------------------
def prepare_params(params, compute_dtype=jnp.float32):
    """One-time weight prep: transpose, fuse biases, optionally cast the matmul
    operands to bf16 (accumulation stays f32 inside the kernel)."""
    prepped = {"layers": []}
    for layer in params["lstm"]:
        prepped["layers"].append({
            "w_ih_t": jnp.transpose(layer["w_ih"]).astype(compute_dtype),
            "w_hh_t": jnp.transpose(layer["w_hh"]).astype(compute_dtype),
            "b": (layer["b_ih"] + layer["b_hh"]).astype(jnp.float32)[None, :],
        })
    prepped["fc_w_t"] = jnp.transpose(params["fc_w"]).astype(compute_dtype)
    prepped["fc_b"] = params["fc_b"].astype(jnp.float32)[None, :]
    return prepped


# ------------------------------- Net forward ---------------------------------
@jax.jit
def net_forward(prepped, x_btd):
    """Equivalent of Net.forward: x (B, T, input_dim) -> (B, output_dim)."""
    B, T, D = x_btd.shape
    layers = prepped["layers"]
    L = len(layers)
    H = layers[0]["w_hh_t"].shape[0]
    O = prepped["fc_w_t"].shape[1]
    mm_dtype = layers[0]["w_ih_t"].dtype
    Bp = _round_up(max(B, 8), 8)                  # pad batch to a sublane multiple

    # batch-first -> time-major, pad batch, flatten time into the row dimension.
    x_tbd = jnp.transpose(x_btd, (1, 0, 2)).astype(mm_dtype)
    x_flat = jnp.zeros((T, Bp, D), mm_dtype).at[:, :B, :].set(x_tbd)
    x_flat = x_flat.reshape(T * Bp, D)

    inputs = [x_flat]
    in_specs = [pl.BlockSpec((T * Bp, D), lambda i: (0, 0))]
    for lyr in layers:
        d_in = lyr["w_ih_t"].shape[0]
        inputs += [lyr["w_ih_t"], lyr["w_hh_t"], lyr["b"]]
        in_specs += [
            pl.BlockSpec((d_in, 4 * H), lambda i: (0, 0)),
            pl.BlockSpec((H, 4 * H), lambda i: (0, 0)),
            pl.BlockSpec((1, 4 * H), lambda i: (0, 0)),
        ]
    inputs += [prepped["fc_w_t"], prepped["fc_b"]]
    in_specs += [pl.BlockSpec((H, O), lambda i: (0, 0)),
                 pl.BlockSpec((1, O), lambda i: (0, 0))]

    kernel = _make_net_kernel(T, Bp, H, L, unroll_time=(T <= 32))

    out_padded = pl.pallas_call(
        kernel,
        out_shape=jax.ShapeDtypeStruct((Bp, O), jnp.float32),
        grid=(1,),
        in_specs=in_specs,
        out_specs=pl.BlockSpec((Bp, O), lambda i: (0, 0)),
        scratch_shapes=[
            pltpu.VMEM((T * Bp, 4 * H), jnp.float32),  # hoisted input projection Zx
            pltpu.VMEM((T * Bp, H), jnp.float32),      # hidden sequence (layer -> layer)
        ],
        compiler_params=pltpu.CompilerParams(
            dimension_semantics=("arbitrary",)),
    )(*inputs)
    # TODO(synk): at toy sizes the (Bp, O=4) store is lane-sparse; pad O / shard the
    # hoisted GEMM across v7x cores only if these dims are scaled up.
    return out_padded[:B]


# ---------------------------- deterministic params ---------------------------
def init_params(key, input_dim, hidden_dim, output_dim, layers):
    k = 1.0 / math.sqrt(hidden_dim)
    params = {"lstm": []}
    for l in range(layers):
        in_dim = input_dim if l == 0 else hidden_dim
        key, k1, k2, k3, k4 = jax.random.split(key, 5)
        params["lstm"].append({
            "w_ih": jax.random.uniform(k1, (4 * hidden_dim, in_dim),
                                       jnp.float32, -k, k),
            "w_hh": jax.random.uniform(k2, (4 * hidden_dim, hidden_dim),
                                       jnp.float32, -k, k),
            "b_ih": jax.random.uniform(k3, (4 * hidden_dim,),
                                       jnp.float32, -k, k),
            "b_hh": jax.random.uniform(k4, (4 * hidden_dim,),
                                       jnp.float32, -k, k),
        })
    key, k1, k2 = jax.random.split(key, 3)
    params["fc_w"] = jax.random.uniform(k1, (output_dim, hidden_dim),
                                        jnp.float32, -k, k)
    params["fc_b"] = jax.random.uniform(k2, (output_dim,),
                                        jnp.float32, -k, k)
    return params


# ------------------------------ pure-JAX reference ----------------------------
def reference_forward(params, x_btd, matmul_dtype=jnp.float32):
    """Pure-JAX LSTM+FC matching torch.nn.LSTM semantics. `matmul_dtype` mirrors
    the kernel's matmul-operand precision policy (accumulation in f32)."""
    B, T, _ = x_btd.shape
    H = params["lstm"][0]["w_hh"].shape[1]

    def mm(a, w_t):
        return jnp.dot(a.astype(matmul_dtype), w_t.astype(matmul_dtype),
                       preferred_element_type=jnp.float32)

    seq = x_btd.astype(jnp.float32)
    for layer in params["lstm"]:
        h = jnp.zeros((B, H), jnp.float32)
        c = jnp.zeros((B, H), jnp.float32)
        outs = []
        for t in range(T):
            z = (mm(seq[:, t], layer["w_ih"].T) + layer["b_ih"]
                 + mm(h, layer["w_hh"].T) + layer["b_hh"])
            i = jax.nn.sigmoid(z[:, 0 * H:1 * H])
            f = jax.nn.sigmoid(z[:, 1 * H:2 * H])
            g = jnp.tanh(z[:, 2 * H:3 * H])
            o = jax.nn.sigmoid(z[:, 3 * H:4 * H])
            c = f * c + i * g
            h = o * jnp.tanh(c)
            outs.append(h)
        seq = jnp.stack(outs, axis=1)
    return mm(seq[:, -1], params["fc_w"].T) + params["fc_b"]


if __name__ == "__main__":
    B, T = 2, 8
    input_dim, hidden_dim, output_dim, layers = 16, 32, 4, 2

    key = jax.random.PRNGKey(0)
    kp, kx = jax.random.split(key)
    params = init_params(kp, input_dim, hidden_dim, output_dim, layers)
    x = jax.random.normal(kx, (B, T, input_dim), jnp.float32)

    # 1) f32 matmul path: must match the PyTorch-semantics reference tightly.
    out_f32 = jax.block_until_ready(
        net_forward(prepare_params(params, jnp.float32), x))
    ref_f32 = reference_forward(params, x, jnp.float32)
    assert out_f32.shape == (B, output_dim)
    assert jnp.allclose(out_f32, ref_f32, atol=1e-4, rtol=1e-4), (out_f32, ref_f32)

    # 2) bf16 matmul-operand path (MXU-native, f32 accumulation): compare against
    #    a reference applying the same precision policy, plus a loose sanity
    #    check against the full-f32 reference.
    out_bf16 = jax.block_until_ready(
        net_forward(prepare_params(params, jnp.bfloat16), x))
    ref_bf16 = reference_forward(params, x, jnp.bfloat16)
    assert jnp.allclose(out_bf16, ref_bf16, atol=1e-2, rtol=1e-2), (out_bf16, ref_bf16)
    assert jnp.allclose(out_bf16, ref_f32, atol=1e-1, rtol=1e-1), (out_bf16, ref_f32)

    print("KERNEL_OK")
</pallas_src>

<mosaic_0001>
module attributes {stable_mosaic.version = 11 : i64} {
  func.func @kernel(%arg0: i32, %arg1: memref<64x16xf32, #tpu.memory_space<vmem>>, %arg2: memref<16x128xf32, #tpu.memory_space<vmem>>, %arg3: memref<32x128xf32, #tpu.memory_space<vmem>>, %arg4: memref<1x128xf32, #tpu.memory_space<vmem>>, %arg5: memref<32x128xf32, #tpu.memory_space<vmem>>, %arg6: memref<32x128xf32, #tpu.memory_space<vmem>>, %arg7: memref<1x128xf32, #tpu.memory_space<vmem>>, %arg8: memref<32x4xf32, #tpu.memory_space<vmem>>, %arg9: memref<1x4xf32, #tpu.memory_space<vmem>>, %arg10: memref<8x4xf32, #tpu.memory_space<vmem>>, %arg11: memref<64x128xf32, #tpu.memory_space<vmem>>, %arg12: memref<64x32xf32, #tpu.memory_space<vmem>>) attributes {dimension_semantics = [#tpu.dimension_semantics<arbitrary>], iteration_bounds = array<i64: 1>, scalar_prefetch = 0 : i64, scratch_operands = 2 : i64, tpu.core_type = #tpu.core_type<tc>, window_params = [{pipeline_mode = #tpu.pipeline_mode<synchronous>, transform_indices = @transform_0, window_bounds = array<i64: 64, 16>}, {pipeline_mode = #tpu.pipeline_mode<synchronous>, transform_indices = @transform_1, window_bounds = array<i64: 16, 128>}, {pipeline_mode = #tpu.pipeline_mode<synchronous>, transform_indices = @transform_2, window_bounds = array<i64: 32, 128>}, {pipeline_mode = #tpu.pipeline_mode<synchronous>, transform_indices = @transform_3, window_bounds = array<i64: 1, 128>}, {pipeline_mode = #tpu.pipeline_mode<synchronous>, transform_indices = @transform_4, window_bounds = array<i64: 32, 128>}, {pipeline_mode = #tpu.pipeline_mode<synchronous>, transform_indices = @transform_5, window_bounds = array<i64: 32, 128>}, {pipeline_mode = #tpu.pipeline_mode<synchronous>, transform_indices = @transform_6, window_bounds = array<i64: 1, 128>}, {pipeline_mode = #tpu.pipeline_mode<synchronous>, transform_indices = @transform_7, window_bounds = array<i64: 32, 4>}, {pipeline_mode = #tpu.pipeline_mode<synchronous>, transform_indices = @transform_8, window_bounds = array<i64: 1, 4>}, {pipeline_mode = #tpu.pipeline_mode<synchronous>, transform_indices = @transform_9, window_bounds = array<i64: 8, 4>}]} {
    %c0 = arith.constant 0 : index
    %c0_0 = arith.constant 0 : index
    %0 = vector.load %arg1[%c0, %c0_0] : memref<64x16xf32, #tpu.memory_space<vmem>>, vector<64x16xf32>
    %c0_1 = arith.constant 0 : index
    %c0_2 = arith.constant 0 : index
    %1 = vector.load %arg2[%c0_1, %c0_2] : memref<16x128xf32, #tpu.memory_space<vmem>>, vector<16x128xf32>
    %cst = arith.constant dense<0.000000e+00> : vector<64x128xf32>
    %2 = tpu.matmul %0, %1, %cst {dimension_numbers = #tpu.dot_dimension_numbers<[1], [0], [0], [1], [0, 0, 1, 1], [], []>} : vector<64x16xf32>, vector<16x128xf32>, vector<64x128xf32> -> vector<64x128xf32>
    %c0_3 = arith.constant 0 : index
    %c0_4 = arith.constant 0 : index
    %3 = vector.load %arg4[%c0_3, %c0_4] : memref<1x128xf32, #tpu.memory_space<vmem>>, vector<1x128xf32>
    %4 = vector.broadcast %3 : vector<1x128xf32> to vector<64x128xf32>
    %5 = arith.addf %2, %4 : vector<64x128xf32>
    %c0_5 = arith.constant 0 : index
    %c0_6 = arith.constant 0 : index
    %6 = vector.load %arg11[%c0_5, %c0_6] : memref<64x128xf32, #tpu.memory_space<vmem>>, vector<64x128xf32>
    tpu.vector_store %arg11[%c0_5, %c0_6], %5 {strides = array<i32>} : memref<64x128xf32, #tpu.memory_space<vmem>>, vector<64x128xf32>,
    %c0_7 = arith.constant 0 : index
    %c0_8 = arith.constant 0 : index
    %7 = vector.load %arg3[%c0_7, %c0_8] : memref<32x128xf32, #tpu.memory_space<vmem>>, vector<32x128xf32>
    %cst_9 = arith.constant 0.000000e+00 : f32
    %8 = vector.broadcast %cst_9 : f32 to vector<8x32xf32>
    %cst_10 = arith.constant 0.000000e+00 : f32
    %9 = vector.broadcast %cst_10 : f32 to vector<8x32xf32>
    %c0_11 = arith.constant 0 : index
    %c0_12 = arith.constant 0 : index
    %10 = vector.load %arg11[%c0_11, %c0_12] : memref<64x128xf32, #tpu.memory_space<vmem>>, vector<8x128xf32>
    %cst_13 = arith.constant dense<0.000000e+00> : vector<8x128xf32>
    %11 = tpu.matmul %8, %7, %cst_13 {dimension_numbers = #tpu.dot_dimension_numbers<[1], [0], [0], [1], [0, 0, 1, 1], [], []>} : vector<8x32xf32>, vector<32x128xf32>, vector<8x128xf32> -> vector<8x128xf32>
    %12 = arith.addf %10, %11 : vector<8x128xf32>
    %13 = vector.extract_strided_slice %12 {offsets = [0, 0], sizes = [8, 32], strides = [1, 1]} : vector<8x128xf32> to vector<8x32xf32>
    %14 = arith.negf %13 : vector<8x32xf32>
    %15 = math.exp %14 : vector<8x32xf32>
    %cst_14 = arith.constant 1.000000e+00 : f32
    %16 = vector.broadcast %cst_14 : f32 to vector<8x32xf32>
    %17 = arith.addf %16, %15 : vector<8x32xf32>
    %18 = arith.divf %16, %17 : vector<8x32xf32>
    %19 = vector.extract_strided_slice %12 {offsets = [0, 32], sizes = [8, 32], strides = [1, 1]} : vector<8x128xf32> to vector<8x32xf32>
    %20 = arith.negf %19 : vector<8x32xf32>
    %21 = math.exp %20 : vector<8x32xf32>
    %cst_15 = arith.constant 1.000000e+00 : f32
    %22 = vector.broadcast %cst_15 : f32 to vector<8x32xf32>
    %23 = arith.addf %22, %21 : vector<8x32xf32>
    %24 = arith.divf %22, %23 : vector<8x32xf32>
    %25 = vector.extract_strided_slice %12 {offsets = [0, 64], sizes = [8, 32], strides = [1, 1]} : vector<8x128xf32> to vector<8x32xf32>
    %26 = math.tanh %25 : vector<8x32xf32>
    %27 = vector.extract_strided_slice %12 {offsets = [0, 96], sizes = [8, 32], strides = [1, 1]} : vector<8x128xf32> to vector<8x32xf32>
    %28 = arith.negf %27 : vector<8x32xf32>
    %29 = math.exp %28 : vector<8x32xf32>
    %cst_16 = arith.constant 1.000000e+00 : f32
    %30 = vector.broadcast %cst_16 : f32 to vector<8x32xf32>
    %31 = arith.addf %30, %29 : vector<8x32xf32>
    %32 = arith.divf %30, %31 : vector<8x32xf32>
    %33 = arith.mulf %24, %9 : vector<8x32xf32>
    %34 = arith.mulf %18, %26 : vector<8x32xf32>
    %35 = arith.addf %33, %34 : vector<8x32xf32>
    %36 = math.tanh %35 : vector<8x32xf32>
    %37 = arith.mulf %32, %36 : vector<8x32xf32>
    %c0_17 = arith.constant 0 : index
    %c0_18 = arith.constant 0 : index
    %38 = vector.load %arg12[%c0_17, %c0_18] : memref<64x32xf32, #tpu.memory_space<vmem>>, vector<8x32xf32>
    tpu.vector_store %arg12[%c0_17, %c0_18], %37 {strides = array<i32>} : memref<64x32xf32, #tpu.memory_space<vmem>>, vector<8x32xf32>,
    %c8 = arith.constant 8 : index
    %c0_19 = arith.constant 0 : index
    %39 = vector.load %arg11[%c8, %c0_19] : memref<64x128xf32, #tpu.memory_space<vmem>>, vector<8x128xf32>
    %cst_20 = arith.constant dense<0.000000e+00> : vector<8x128xf32>
    %40 = tpu.matmul %37, %7, %cst_20 {dimension_numbers = #tpu.dot_dimension_numbers<[1], [0], [0], [1], [0, 0, 1, 1], [], []>} : vector<8x32xf32>, vector<32x128xf32>, vector<8x128xf32> -> vector<8x128xf32>
    %41 = arith.addf %39, %40 : vector<8x128xf32>
    %42 = vector.extract_strided_slice %41 {offsets = [0, 0], sizes = [8, 32], strides = [1, 1]} : vector<8x128xf32> to vector<8x32xf32>
    %43 = arith.negf %42 : vector<8x32xf32>
    %44 = math.exp %43 : vector<8x32xf32>
    %cst_21 = arith.constant 1.000000e+00 : f32
    %45 = vector.broadcast %cst_21 : f32 to vector<8x32xf32>
    %46 = arith.addf %45, %44 : vector<8x32xf32>
    %47 = arith.divf %45, %46 : vector<8x32xf32>
    %48 = vector.extract_strided_slice %41 {offsets = [0, 32], sizes = [8, 32], strides = [1, 1]} : vector<8x128xf32> to vector<8x32xf32>
    %49 = arith.negf %48 : vector<8x32xf32>
    %50 = math.exp %49 : vector<8x32xf32>
    %cst_22 = arith.constant 1.000000e+00 : f32
    %51 = vector.broadcast %cst_22 : f32 to vector<8x32xf32>
    %52 = arith.addf %51, %50 : vector<8x32xf32>
    %53 = arith.divf %51, %52 : vector<8x32xf32>
    %54 = vector.extract_strided_slice %41 {offsets = [0, 64], sizes = [8, 32], strides = [1, 1]} : vector<8x128xf32> to vector<8x32xf32>
    %55 = math.tanh %54 : vector<8x32xf32>
    %56 = vector.extract_strided_slice %41 {offsets = [0, 96], sizes = [8, 32], strides = [1, 1]} : vector<8x128xf32> to vector<8x32xf32>
    %57 = arith.negf %56 : vector<8x32xf32>
    %58 = math.exp %57 : vector<8x32xf32>
    %cst_23 = arith.constant 1.000000e+00 : f32
    %59 = vector.broadcast %cst_23 : f32 to vector<8x32xf32>
    %60 = arith.addf %59, %58 : vector<8x32xf32>
    %61 = arith.divf %59, %60 : vector<8x32xf32>
    %62 = arith.mulf %53, %35 : vector<8x32xf32>
    %63 = arith.mulf %47, %55 : vector<8x32xf32>
    %64 = arith.addf %62, %63 : vector<8x32xf32>
    %65 = math.tanh %64 : vector<8x32xf32>
    %66 = arith.mulf %61, %65 : vector<8x32xf32>
    %c8_24 = arith.constant 8 : index
    %c0_25 = arith.constant 0 : index
    %67 = vector.load %arg12[%c8_24, %c0_25] : memref<64x32xf32, #tpu.memory_space<vmem>>, vector<8x32xf32>
    tpu.vector_store %arg12[%c8_24, %c0_25], %66 {strides = array<i32>} : memref<64x32xf32, #tpu.memory_space<vmem>>, vector<8x32xf32>,
    %c16 = arith.constant 16 : index
    %c0_26 = arith.constant 0 : index
    %68 = vector.load %arg11[%c16, %c0_26] : memref<64x128xf32, #tpu.memory_space<vmem>>, vector<8x128xf32>
    %cst_27 = arith.constant dense<0.000000e+00> : vector<8x128xf32>
    %69 = tpu.matmul %66, %7, %cst_27 {dimension_numbers = #tpu.dot_dimension_numbers<[1], [0], [0], [1], [0, 0, 1, 1], [], []>} : vector<8x32xf32>, vector<32x128xf32>, vector<8x128xf32> -> vector<8x128xf32>
    %70 = arith.addf %68, %69 : vector<8x128xf32>
    %71 = vector.extract_strided_slice %70 {offsets = [0, 0], sizes = [8, 32], strides = [1, 1]} : vector<8x128xf32> to vector<8x32xf32>
    %72 = arith.negf %71 : vector<8x32xf32>
    %73 = math.exp %72 : vector<8x32xf32>
    %cst_28 = arith.constant 1.000000e+00 : f32
    %74 = vector.broadcast %cst_28 : f32 to vector<8x32xf32>
    %75 = arith.addf %74, %73 : vector<8x32xf32>
    %76 = arith.divf %74, %75 : vector<8x32xf32>
    %77 = vector.extract_strided_slice %70 {offsets = [0, 32], sizes = [8, 32], strides = [1, 1]} : vector<8x128xf32> to vector<8x32xf32>
    %78 = arith.negf %77 : vector<8x32xf32>
    %79 = math.exp %78 : vector<8x32xf32>
    %cst_29 = arith.constant 1.000000e+00 : f32
    %80 = vector.broadcast %cst_29 : f32 to vector<8x32xf32>
    %81 = arith.addf %80, %79 : vector<8x32xf32>
    %82 = arith.divf %80, %81 : vector<8x32xf32>
    %83 = vector.extract_strided_slice %70 {offsets = [0, 64], sizes = [8, 32], strides = [1, 1]} : vector<8x128xf32> to vector<8x32xf32>
    %84 = math.tanh %83 : vector<8x32xf32>
    %85 = vector.extract_strided_slice %70 {offsets = [0, 96], sizes = [8, 32], strides = [1, 1]} : vector<8x128xf32> to vector<8x32xf32>
    %86 = arith.negf %85 : vector<8x32xf32>
    %87 = math.exp %86 : vector<8x32xf32>
    %cst_30 = arith.constant 1.000000e+00 : f32
    %88 = vector.broadcast %cst_30 : f32 to vector<8x32xf32>
    %89 = arith.addf %88, %87 : vector<8x32xf32>
    %90 = arith.divf %88, %89 : vector<8x32xf32>
    %91 = arith.mulf %82, %64 : vector<8x32xf32>
    %92 = arith.mulf %76, %84 : vector<8x32xf32>
    %93 = arith.addf %91, %92 : vector<8x32xf32>
    %94 = math.tanh %93 : vector<8x32xf32>
    %95 = arith.mulf %90, %94 : vector<8x32xf32>
    %c16_31 = arith.constant 16 : index
    %c0_32 = arith.constant 0 : index
    %96 = vector.load %arg12[%c16_31, %c0_32] : memref<64x32xf32, #tpu.memory_space<vmem>>, vector<8x32xf32>
    tpu.vector_store %arg12[%c16_31, %c0_32], %95 {strides = array<i32>} : memref<64x32xf32, #tpu.memory_space<vmem>>, vector<8x32xf32>,
    %c24 = arith.constant 24 : index
    %c0_33 = arith.constant 0 : index
    %97 = vector.load %arg11[%c24, %c0_33] : memref<64x128xf32, #tpu.memory_space<vmem>>, vector<8x128xf32>
    %cst_34 = arith.constant dense<0.000000e+00> : vector<8x128xf32>
    %98 = tpu.matmul %95, %7, %cst_34 {dimension_numbers = #tpu.dot_dimension_numbers<[1], [0], [0], [1], [0, 0, 1, 1], [], []>} : vector<8x32xf32>, vector<32x128xf32>, vector<8x128xf32> -> vector<8x128xf32>
    %99 = arith.addf %97, %98 : vector<8x128xf32>
    %100 = vector.extract_strided_slice %99 {offsets = [0, 0], sizes = [8, 32], strides = [1, 1]} : vector<8x128xf32> to vector<8x32xf32>
    %101 = arith.negf %100 : vector<8x32xf32>
    %102 = math.exp %101 : vector<8x32xf32>
    %cst_35 = arith.constant 1.000000e+00 : f32
    %103 = vector.broadcast %cst_35 : f32 to vector<8x32xf32>
    %104 = arith.addf %103, %102 : vector<8x32xf32>
    %105 = arith.divf %103, %104 : vector<8x32xf32>
    %106 = vector.extract_strided_slice %99 {offsets = [0, 32], sizes = [8, 32], strides = [1, 1]} : vector<8x128xf32> to vector<8x32xf32>
    %107 = arith.negf %106 : vector<8x32xf32>
    %108 = math.exp %107 : vector<8x32xf32>
    %cst_36 = arith.constant 1.000000e+00 : f32
    %109 = vector.broadcast %cst_36 : f32 to vector<8x32xf32>
    %110 = arith.addf %109, %108 : vector<8x32xf32>
    %111 = arith.divf %109, %110 : vector<8x32xf32>
    %112 = vector.extract_strided_slice %99 {offsets = [0, 64], sizes = [8, 32], strides = [1, 1]} : vector<8x128xf32> to vector<8x32xf32>
    %113 = math.tanh %112 : vector<8x32xf32>
    %114 = vector.extract_strided_slice %99 {offsets = [0, 96], sizes = [8, 32], strides = [1, 1]} : vector<8x128xf32> to vector<8x32xf32>
    %115 = arith.negf %114 : vector<8x32xf32>
    %116 = math.exp %115 : vector<8x32xf32>
    %cst_37 = arith.constant 1.000000e+00 : f32
    %117 = vector.broadcast %cst_37 : f32 to vector<8x32xf32>
    %118 = arith.addf %117, %116 : vector<8x32xf32>
    %119 = arith.divf %117, %118 : vector<8x32xf32>
    %120 = arith.mulf %111, %93 : vector<8x32xf32>
    %121 = arith.mulf %105, %113 : vector<8x32xf32>
    %122 = arith.addf %120, %121 : vector<8x32xf32>
    %123 = math.tanh %122 : vector<8x32xf32>
    %124 = arith.mulf %119, %123 : vector<8x32xf32>
    %c24_38 = arith.constant 24 : index
    %c0_39 = arith.constant 0 : index
    %125 = vector.load %arg12[%c24_38, %c0_39] : memref<64x32xf32, #tpu.memory_space<vmem>>, vector<8x32xf32>
    tpu.vector_store %arg12[%c24_38, %c0_39], %124 {strides = array<i32>} : memref<64x32xf32, #tpu.memory_space<vmem>>, vector<8x32xf32>,
    %c32 = arith.constant 32 : index
    %c0_40 = arith.constant 0 : index
    %126 = vector.load %arg11[%c32, %c0_40] : memref<64x128xf32, #tpu.memory_space<vmem>>, vector<8x128xf32>
    %cst_41 = arith.constant dense<0.000000e+00> : vector<8x128xf32>
    %127 = tpu.matmul %124, %7, %cst_41 {dimension_numbers = #tpu.dot_dimension_numbers<[1], [0], [0], [1], [0, 0, 1, 1], [], []>} : vector<8x32xf32>, vector<32x128xf32>, vector<8x128xf32> -> vector<8x128xf32>
    %128 = arith.addf %126, %127 : vector<8x128xf32>
    %129 = vector.extract_strided_slice %128 {offsets = [0, 0], sizes = [8, 32], strides = [1, 1]} : vector<8x128xf32> to vector<8x32xf32>
    %130 = arith.negf %129 : vector<8x32xf32>
    %131 = math.exp %130 : vector<8x32xf32>
    %cst_42 = arith.constant 1.000000e+00 : f32
    %132 = vector.broadcast %cst_42 : f32 to vector<8x32xf32>
    %133 = arith.addf %132, %131 : vector<8x32xf32>
    %134 = arith.divf %132, %133 : vector<8x32xf32>
    %135 = vector.extract_strided_slice %128 {offsets = [0, 32], sizes = [8, 32], strides = [1, 1]} : vector<8x128xf32> to vector<8x32xf32>
    %136 = arith.negf %135 : vector<8x32xf32>
    %137 = math.exp %136 : vector<8x32xf32>
    %cst_43 = arith.constant 1.000000e+00 : f32
    %138 = vector.broadcast %cst_43 : f32 to vector<8x32xf32>
    %139 = arith.addf %138, %137 : vector<8x32xf32>
    %140 = arith.divf %138, %139 : vector<8x32xf32>
    %141 = vector.extract_strided_slice %128 {offsets = [0, 64], sizes = [8, 32], strides = [1, 1]} : vector<8x128xf32> to vector<8x32xf32>
    %142 = math.tanh %141 : vector<8x32xf32>
    %143 = vector.extract_strided_slice %128 {offsets = [0, 96], sizes = [8, 32], strides = [1, 1]} : vector<8x128xf32> to vector<8x32xf32>
    %144 = arith.negf %143 : vector<8x32xf32>
    %145 = math.exp %144 : vector<8x32xf32>
    %cst_44 = arith.constant 1.000000e+00 : f32
    %146 = vector.broadcast %cst_44 : f32 to vector<8x32xf32>
    %147 = arith.addf %146, %145 : vector<8x32xf32>
    %148 = arith.divf %146, %147 : vector<8x32xf32>
    %149 = arith.mulf %140, %122 : vector<8x32xf32>
    %150 = arith.mulf %134, %142 : vector<8x32xf32>
    %151 = arith.addf %149, %150 : vector<8x32xf32>
    %152 = math.tanh %151 : vector<8x32xf32>
    %153 = arith.mulf %148, %152 : vector<8x32xf32>
    %c32_45 = arith.constant 32 : index
    %c0_46 = arith.constant 0 : index
    %154 = vector.load %arg12[%c32_45, %c0_46] : memref<64x32xf32, #tpu.memory_space<vmem>>, vector<8x32xf32>
    tpu.vector_store %arg12[%c32_45, %c0_46], %153 {strides = array<i32>} : memref<64x32xf32, #tpu.memory_space<vmem>>, vector<8x32xf32>,
    %c40 = arith.constant 40 : index
    %c0_47 = arith.constant 0 : index
    %155 = vector.load %arg11[%c40, %c0_47] : memref<64x128xf32, #tpu.memory_space<vmem>>, vector<8x128xf32>
    %cst_48 = arith.constant dense<0.000000e+00> : vector<8x128xf32>
    %156 = tpu.matmul %153, %7, %cst_48 {dimension_numbers = #tpu.dot_dimension_numbers<[1], [0], [0], [1], [0, 0, 1, 1], [], []>} : vector<8x32xf32>, vector<32x128xf32>, vector<8x128xf32> -> vector<8x128xf32>
    %157 = arith.addf %155, %156 : vector<8x128xf32>
    %158 = vector.extract_strided_slice %157 {offsets = [0, 0], sizes = [8, 32], strides = [1, 1]} : vector<8x128xf32> to vector<8x32xf32>
    %159 = arith.negf %158 : vector<8x32xf32>
    %160 = math.exp %159 : vector<8x32xf32>
    %cst_49 = arith.constant 1.000000e+00 : f32
    %161 = vector.broadcast %cst_49 : f32 to vector<8x32xf32>
    %162 = arith.addf %161, %160 : vector<8x32xf32>
    %163 = arith.divf %161, %162 : vector<8x32xf32>
    %164 = vector.extract_strided_slice %157 {offsets = [0, 32], sizes = [8, 32], strides = [1, 1]} : vector<8x128xf32> to vector<8x32xf32>
    %165 = arith.negf %164 : vector<8x32xf32>
    %166 = math.exp %165 : vector<8x32xf32>
    %cst_50 = arith.constant 1.000000e+00 : f32
    %167 = vector.broadcast %cst_50 : f32 to vector<8x32xf32>
    %168 = arith.addf %167, %166 : vector<8x32xf32>
    %169 = arith.divf %167, %168 : vector<8x32xf32>
    %170 = vector.extract_strided_slice %157 {offsets = [0, 64], sizes = [8, 32], strides = [1, 1]} : vector<8x128xf32> to vector<8x32xf32>
    %171 = math.tanh %170 : vector<8x32xf32>
    %172 = vector.extract_strided_slice %157 {offsets = [0, 96], sizes = [8, 32], strides = [1, 1]} : vector<8x128xf32> to vector<8x32xf32>
    %173 = arith.negf %172 : vector<8x32xf32>
    %174 = math.exp %173 : vector<8x32xf32>
    %cst_51 = arith.constant 1.000000e+00 : f32
    %175 = vector.broadcast %cst_51 : f32 to vector<8x32xf32>
    %176 = arith.addf %175, %174 : vector<8x32xf32>
    %177 = arith.divf %175, %176 : vector<8x32xf32>
    %178 = arith.mulf %169, %151 : vector<8x32xf32>
    %179 = arith.mulf %163, %171 : vector<8x32xf32>
    %180 = arith.addf %178, %179 : vector<8x32xf32>
    %181 = math.tanh %180 : vector<8x32xf32>
    %182 = arith.mulf %177, %181 : vector<8x32xf32>
    %c40_52 = arith.constant 40 : index
    %c0_53 = arith.constant 0 : index
    %183 = vector.load %arg12[%c40_52, %c0_53] : memref<64x32xf32, #tpu.memory_space<vmem>>, vector<8x32xf32>
    tpu.vector_store %arg12[%c40_52, %c0_53], %182 {strides = array<i32>} : memref<64x32xf32, #tpu.memory_space<vmem>>, vector<8x32xf32>,
    %c48 = arith.constant 48 : index
    %c0_54 = arith.constant 0 : index
    %184 = vector.load %arg11[%c48, %c0_54] : memref<64x128xf32, #tpu.memory_space<vmem>>, vector<8x128xf32>
    %cst_55 = arith.constant dense<0.000000e+00> : vector<8x128xf32>
    %185 = tpu.matmul %182, %7, %cst_55 {dimension_numbers = #tpu.dot_dimension_numbers<[1], [0], [0], [1], [0, 0, 1, 1], [], []>} : vector<8x32xf32>, vector<32x128xf32>, vector<8x128xf32> -> vector<8x128xf32>
    %186 = arith.addf %184, %185 : vector<8x128xf32>
    %187 = vector.extract_strided_slice %186 {offsets = [0, 0], sizes = [8, 32], strides = [1, 1]} : vector<8x128xf32> to vector<8x32xf32>
    %188 = arith.negf %187 : vector<8x32xf32>
    %189 = math.exp %188 : vector<8x32xf32>
    %cst_56 = arith.constant 1.000000e+00 : f32
    %190 = vector.broadcast %cst_56 : f32 to vector<8x32xf32>
    %191 = arith.addf %190, %189 : vector<8x32xf32>
    %192 = arith.divf %190, %191 : vector<8x32xf32>
    %193 = vector.extract_strided_slice %186 {offsets = [0, 32], sizes = [8, 32], strides = [1, 1]} : vector<8x128xf32> to vector<8x32xf32>
    %194 = arith.negf %193 : vector<8x32xf32>
    %195 = math.exp %194 : vector<8x32xf32>
    %cst_57 = arith.constant 1.000000e+00 : f32
    %196 = vector.broadcast %cst_57 : f32 to vector<8x32xf32>
    %197 = arith.addf %196, %195 : vector<8x32xf32>
    %198 = arith.divf %196, %197 : vector<8x32xf32>
    %199 = vector.extract_strided_slice %186 {offsets = [0, 64], sizes = [8, 32], strides = [1, 1]} : vector<8x128xf32> to vector<8x32xf32>
    %200 = math.tanh %199 : vector<8x32xf32>
    %201 = vector.extract_strided_slice %186 {offsets = [0, 96], sizes = [8, 32], strides = [1, 1]} : vector<8x128xf32> to vector<8x32xf32>
    %202 = arith.negf %201 : vector<8x32xf32>
    %203 = math.exp %202 : vector<8x32xf32>
    %cst_58 = arith.constant 1.000000e+00 : f32
    %204 = vector.broadcast %cst_58 : f32 to vector<8x32xf32>
    %205 = arith.addf %204, %203 : vector<8x32xf32>
    %206 = arith.divf %204, %205 : vector<8x32xf32>
    %207 = arith.mulf %198, %180 : vector<8x32xf32>
    %208 = arith.mulf %192, %200 : vector<8x32xf32>
    %209 = arith.addf %207, %208 : vector<8x32xf32>
    %210 = math.tanh %209 : vector<8x32xf32>
    %211 = arith.mulf %206, %210 : vector<8x32xf32>
    %c48_59 = arith.constant 48 : index
    %c0_60 = arith.constant 0 : index
    %212 = vector.load %arg12[%c48_59, %c0_60] : memref<64x32xf32, #tpu.memory_space<vmem>>, vector<8x32xf32>
    tpu.vector_store %arg12[%c48_59, %c0_60], %211 {strides = array<i32>} : memref<64x32xf32, #tpu.memory_space<vmem>>, vector<8x32xf32>,
    %c56 = arith.constant 56 : index
    %c0_61 = arith.constant 0 : index
    %213 = vector.load %arg11[%c56, %c0_61] : memref<64x128xf32, #tpu.memory_space<vmem>>, vector<8x128xf32>
    %cst_62 = arith.constant dense<0.000000e+00> : vector<8x128xf32>
    %214 = tpu.matmul %211, %7, %cst_62 {dimension_numbers = #tpu.dot_dimension_numbers<[1], [0], [0], [1], [0, 0, 1, 1], [], []>} : vector<8x32xf32>, vector<32x128xf32>, vector<8x128xf32> -> vector<8x128xf32>
    %215 = arith.addf %213, %214 : vector<8x128xf32>
    %216 = vector.extract_strided_slice %215 {offsets = [0, 0], sizes = [8, 32], strides = [1, 1]} : vector<8x128xf32> to vector<8x32xf32>
    %217 = arith.negf %216 : vector<8x32xf32>
    %218 = math.exp %217 : vector<8x32xf32>
    %cst_63 = arith.constant 1.000000e+00 : f32
    %219 = vector.broadcast %cst_63 : f32 to vector<8x32xf32>
    %220 = arith.addf %219, %218 : vector<8x32xf32>
    %221 = arith.divf %219, %220 : vector<8x32xf32>
    %222 = vector.extract_strided_slice %215 {offsets = [0, 32], sizes = [8, 32], strides = [1, 1]} : vector<8x128xf32> to vector<8x32xf32>
    %223 = arith.negf %222 : vector<8x32xf32>
    %224 = math.exp %223 : vector<8x32xf32>
    %cst_64 = arith.constant 1.000000e+00 : f32
    %225 = vector.broadcast %cst_64 : f32 to vector<8x32xf32>
    %226 = arith.addf %225, %224 : vector<8x32xf32>
    %227 = arith.divf %225, %226 : vector<8x32xf32>
    %228 = vector.extract_strided_slice %215 {offsets = [0, 64], sizes = [8, 32], strides = [1, 1]} : vector<8x128xf32> to vector<8x32xf32>
    %229 = math.tanh %228 : vector<8x32xf32>
    %230 = vector.extract_strided_slice %215 {offsets = [0, 96], sizes = [8, 32], strides = [1, 1]} : vector<8x128xf32> to vector<8x32xf32>
    %231 = arith.negf %230 : vector<8x32xf32>
    %232 = math.exp %231 : vector<8x32xf32>
    %cst_65 = arith.constant 1.000000e+00 : f32
    %233 = vector.broadcast %cst_65 : f32 to vector<8x32xf32>
    %234 = arith.addf %233, %232 : vector<8x32xf32>
    %235 = arith.divf %233, %234 : vector<8x32xf32>
    %236 = arith.mulf %227, %209 : vector<8x32xf32>
    %237 = arith.mulf %221, %229 : vector<8x32xf32>
    %238 = arith.addf %236, %237 : vector<8x32xf32>
    %239 = math.tanh %238 : vector<8x32xf32>
    %240 = arith.mulf %235, %239 : vector<8x32xf32>
    %c56_66 = arith.constant 56 : index
    %c0_67 = arith.constant 0 : index
    %241 = vector.load %arg12[%c56_66, %c0_67] : memref<64x32xf32, #tpu.memory_space<vmem>>, vector<8x32xf32>
    tpu.vector_store %arg12[%c56_66, %c0_67], %240 {strides = array<i32>} : memref<64x32xf32, #tpu.memory_space<vmem>>, vector<8x32xf32>,
    %c0_68 = arith.constant 0 : index
    %c0_69 = arith.constant 0 : index
    %242 = vector.load %arg12[%c0_68, %c0_69] : memref<64x32xf32, #tpu.memory_space<vmem>>, vector<64x32xf32>
    %c0_70 = arith.constant 0 : index
    %c0_71 = arith.constant 0 : index
    %243 = vector.load %arg5[%c0_70, %c0_71] : memref<32x128xf32, #tpu.memory_space<vmem>>, vector<32x128xf32>
    %cst_72 = arith.constant dense<0.000000e+00> : vector<64x128xf32>
    %244 = tpu.matmul %242, %243, %cst_72 {dimension_numbers = #tpu.dot_dimension_numbers<[1], [0], [0], [1], [0, 0, 1, 1], [], []>} : vector<64x32xf32>, vector<32x128xf32>, vector<64x128xf32> -> vector<64x128xf32>
    %c0_73 = arith.constant 0 : index
    %c0_74 = arith.constant 0 : index
    %245 = vector.load %arg7[%c0_73, %c0_74] : memref<1x128xf32, #tpu.memory_space<vmem>>, vector<1x128xf32>
    %246 = vector.broadcast %245 : vector<1x128xf32> to vector<64x128xf32>
    %247 = arith.addf %244, %246 : vector<64x128xf32>
    %c0_75 = arith.constant 0 : index
    %c0_76 = arith.constant 0 : index
    %248 = vector.load %arg11[%c0_75, %c0_76] : memref<64x128xf32, #tpu.memory_space<vmem>>, vector<64x128xf32>
    tpu.vector_store %arg11[%c0_75, %c0_76], %247 {strides = array<i32>} : memref<64x128xf32, #tpu.memory_space<vmem>>, vector<64x128xf32>,
    %c0_77 = arith.constant 0 : index
    %c0_78 = arith.constant 0 : index
    %249 = vector.load %arg6[%c0_77, %c0_78] : memref<32x128xf32, #tpu.memory_space<vmem>>, vector<32x128xf32>
    %cst_79 = arith.constant 0.000000e+00 : f32
    %250 = vector.broadcast %cst_79 : f32 to vector<8x32xf32>
    %cst_80 = arith.constant 0.000000e+00 : f32
    %251 = vector.broadcast %cst_80 : f32 to vector<8x32xf32>
    %c0_81 = arith.constant 0 : index
    %c0_82 = arith.constant 0 : index
    %252 = vector.load %arg11[%c0_81, %c0_82] : memref<64x128xf32, #tpu.memory_space<vmem>>, vector<8x128xf32>
    %cst_83 = arith.constant dense<0.000000e+00> : vector<8x128xf32>
    %253 = tpu.matmul %250, %249, %cst_83 {dimension_numbers = #tpu.dot_dimension_numbers<[1], [0], [0], [1], [0, 0, 1, 1], [], []>} : vector<8x32xf32>, vector<32x128xf32>, vector<8x128xf32> -> vector<8x128xf32>
    %254 = arith.addf %252, %253 : vector<8x128xf32>
    %255 = vector.extract_strided_slice %254 {offsets = [0, 0], sizes = [8, 32], strides = [1, 1]} : vector<8x128xf32> to vector<8x32xf32>
    %256 = arith.negf %255 : vector<8x32xf32>
    %257 = math.exp %256 : vector<8x32xf32>
    %cst_84 = arith.constant 1.000000e+00 : f32
    %258 = vector.broadcast %cst_84 : f32 to vector<8x32xf32>
    %259 = arith.addf %258, %257 : vector<8x32xf32>
    %260 = arith.divf %258, %259 : vector<8x32xf32>
    %261 = vector.extract_strided_slice %254 {offsets = [0, 32], sizes = [8, 32], strides = [1, 1]} : vector<8x128xf32> to vector<8x32xf32>
    %262 = arith.negf %261 : vector<8x32xf32>
    %263 = math.exp %262 : vector<8x32xf32>
    %cst_85 = arith.constant 1.000000e+00 : f32
    %264 = vector.broadcast %cst_85 : f32 to vector<8x32xf32>
    %265 = arith.addf %264, %263 : vector<8x32xf32>
    %266 = arith.divf %264, %265 : vector<8x32xf32>
    %267 = vector.extract_strided_slice %254 {offsets = [0, 64], sizes = [8, 32], strides = [1, 1]} : vector<8x128xf32> to vector<8x32xf32>
    %268 = math.tanh %267 : vector<8x32xf32>
    %269 = vector.extract_strided_slice %254 {offsets = [0, 96], sizes = [8, 32], strides = [1, 1]} : vector<8x128xf32> to vector<8x32xf32>
    %270 = arith.negf %269 : vector<8x32xf32>
    %271 = math.exp %270 : vector<8x32xf32>
    %cst_86 = arith.constant 1.000000e+00 : f32
    %272 = vector.broadcast %cst_86 : f32 to vector<8x32xf32>
    %273 = arith.addf %272, %271 : vector<8x32xf32>
    %274 = arith.divf %272, %273 : vector<8x32xf32>
    %275 = arith.mulf %266, %251 : vector<8x32xf32>
    %276 = arith.mulf %260, %268 : vector<8x32xf32>
    %277 = arith.addf %275, %276 : vector<8x32xf32>
    %278 = math.tanh %277 : vector<8x32xf32>
    %279 = arith.mulf %274, %278 : vector<8x32xf32>
    %c8_87 = arith.constant 8 : index
    %c0_88 = arith.constant 0 : index
    %280 = vector.load %arg11[%c8_87, %c0_88] : memref<64x128xf32, #tpu.memory_space<vmem>>, vector<8x128xf32>
    %cst_89 = arith.constant dense<0.000000e+00> : vector<8x128xf32>
    %281 = tpu.matmul %279, %249, %cst_89 {dimension_numbers = #tpu.dot_dimension_numbers<[1], [0], [0], [1], [0, 0, 1, 1], [], []>} : vector<8x32xf32>, vector<32x128xf32>, vector<8x128xf32> -> vector<8x128xf32>
    %282 = arith.addf %280, %281 : vector<8x128xf32>
    %283 = vector.extract_strided_slice %282 {offsets = [0, 0], sizes = [8, 32], strides = [1, 1]} : vector<8x128xf32> to vector<8x32xf32>
    %284 = arith.negf %283 : vector<8x32xf32>
    %285 = math.exp %284 : vector<8x32xf32>
    %cst_90 = arith.constant 1.000000e+00 : f32
    %286 = vector.broadcast %cst_90 : f32 to vector<8x32xf32>
    %287 = arith.addf %286, %285 : vector<8x32xf32>
    %288 = arith.divf %286, %287 : vector<8x32xf32>
    %289 = vector.extract_strided_slice %282 {offsets = [0, 32], sizes = [8, 32], strides = [1, 1]} : vector<8x128xf32> to vector<8x32xf32>
    %290 = arith.negf %289 : vector<8x32xf32>
    %291 = math.exp %290 : vector<8x32xf32>
    %cst_91 = arith.constant 1.000000e+00 : f32
    %292 = vector.broadcast %cst_91 : f32 to vector<8x32xf32>
    %293 = arith.addf %292, %291 : vector<8x32xf32>
    %294 = arith.divf %292, %293 : vector<8x32xf32>
    %295 = vector.extract_strided_slice %282 {offsets = [0, 64], sizes = [8, 32], strides = [1, 1]} : vector<8x128xf32> to vector<8x32xf32>
    %296 = math.tanh %295 : vector<8x32xf32>
    %297 = vector.extract_strided_slice %282 {offsets = [0, 96], sizes = [8, 32], strides = [1, 1]} : vector<8x128xf32> to vector<8x32xf32>
    %298 = arith.negf %297 : vector<8x32xf32>
    %299 = math.exp %298 : vector<8x32xf32>
    %cst_92 = arith.constant 1.000000e+00 : f32
    %300 = vector.broadcast %cst_92 : f32 to vector<8x32xf32>
    %301 = arith.addf %300, %299 : vector<8x32xf32>
    %302 = arith.divf %300, %301 : vector<8x32xf32>
    %303 = arith.mulf %294, %277 : vector<8x32xf32>
    %304 = arith.mulf %288, %296 : vector<8x32xf32>
    %305 = arith.addf %303, %304 : vector<8x32xf32>
    %306 = math.tanh %305 : vector<8x32xf32>
    %307 = arith.mulf %302, %306 : vector<8x32xf32>
    %c16_93 = arith.constant 16 : index
    %c0_94 = arith.constant 0 : index
    %308 = vector.load %arg11[%c16_93, %c0_94] : memref<64x128xf32, #tpu.memory_space<vmem>>, vector<8x128xf32>
    %cst_95 = arith.constant dense<0.000000e+00> : vector<8x128xf32>
    %309 = tpu.matmul %307, %249, %cst_95 {dimension_numbers = #tpu.dot_dimension_numbers<[1], [0], [0], [1], [0, 0, 1, 1], [], []>} : vector<8x32xf32>, vector<32x128xf32>, vector<8x128xf32> -> vector<8x128xf32>
    %310 = arith.addf %308, %309 : vector<8x128xf32>
    %311 = vector.extract_strided_slice %310 {offsets = [0, 0], sizes = [8, 32], strides = [1, 1]} : vector<8x128xf32> to vector<8x32xf32>
    %312 = arith.negf %311 : vector<8x32xf32>
    %313 = math.exp %312 : vector<8x32xf32>
    %cst_96 = arith.constant 1.000000e+00 : f32
    %314 = vector.broadcast %cst_96 : f32 to vector<8x32xf32>
    %315 = arith.addf %314, %313 : vector<8x32xf32>
    %316 = arith.divf %314, %315 : vector<8x32xf32>
    %317 = vector.extract_strided_slice %310 {offsets = [0, 32], sizes = [8, 32], strides = [1, 1]} : vector<8x128xf32> to vector<8x32xf32>
    %318 = arith.negf %317 : vector<8x32xf32>
    %319 = math.exp %318 : vector<8x32xf32>
    %cst_97 = arith.constant 1.000000e+00 : f32
    %320 = vector.broadcast %cst_97 : f32 to vector<8x32xf32>
    %321 = arith.addf %320, %319 : vector<8x32xf32>
    %322 = arith.divf %320, %321 : vector<8x32xf32>
    %323 = vector.extract_strided_slice %310 {offsets = [0, 64], sizes = [8, 32], strides = [1, 1]} : vector<8x128xf32> to vector<8x32xf32>
    %324 = math.tanh %323 : vector<8x32xf32>
    %325 = vector.extract_strided_slice %310 {offsets = [0, 96], sizes = [8, 32], strides = [1, 1]} : vector<8x128xf32> to vector<8x32xf32>
    %326 = arith.negf %325 : vector<8x32xf32>
    %327 = math.exp %326 : vector<8x32xf32>
    %cst_98 = arith.constant 1.000000e+00 : f32
    %328 = vector.broadcast %cst_98 : f32 to vector<8x32xf32>
    %329 = arith.addf %328, %327 : vector<8x32xf32>
    %330 = arith.divf %328, %329 : vector<8x32xf32>
    %331 = arith.mulf %322, %305 : vector<8x32xf32>
    %332 = arith.mulf %316, %324 : vector<8x32xf32>
    %333 = arith.addf %331, %332 : vector<8x32xf32>
    %334 = math.tanh %333 : vector<8x32xf32>
    %335 = arith.mulf %330, %334 : vector<8x32xf32>
    %c24_99 = arith.constant 24 : index
    %c0_100 = arith.constant 0 : index
    %336 = vector.load %arg11[%c24_99, %c0_100] : memref<64x128xf32, #tpu.memory_space<vmem>>, vector<8x128xf32>
    %cst_101 = arith.constant dense<0.000000e+00> : vector<8x128xf32>
    %337 = tpu.matmul %335, %249, %cst_101 {dimension_numbers = #tpu.dot_dimension_numbers<[1], [0], [0], [1], [0, 0, 1, 1], [], []>} : vector<8x32xf32>, vector<32x128xf32>, vector<8x128xf32> -> vector<8x128xf32>
    %338 = arith.addf %336, %337 : vector<8x128xf32>
    %339 = vector.extract_strided_slice %338 {offsets = [0, 0], sizes = [8, 32], strides = [1, 1]} : vector<8x128xf32> to vector<8x32xf32>
    %340 = arith.negf %339 : vector<8x32xf32>
    %341 = math.exp %340 : vector<8x32xf32>
    %cst_102 = arith.constant 1.000000e+00 : f32
    %342 = vector.broadcast %cst_102 : f32 to vector<8x32xf32>
    %343 = arith.addf %342, %341 : vector<8x32xf32>
    %344 = arith.divf %342, %343 : vector<8x32xf32>
    %345 = vector.extract_strided_slice %338 {offsets = [0, 32], sizes = [8, 32], strides = [1, 1]} : vector<8x128xf32> to vector<8x32xf32>
    %346 = arith.negf %345 : vector<8x32xf32>
    %347 = math.exp %346 : vector<8x32xf32>
    %cst_103 = arith.constant 1.000000e+00 : f32
    %348 = vector.broadcast %cst_103 : f32 to vector<8x32xf32>
    %349 = arith.addf %348, %347 : vector<8x32xf32>
    %350 = arith.divf %348, %349 : vector<8x32xf32>
    %351 = vector.extract_strided_slice %338 {offsets = [0, 64], sizes = [8, 32], strides = [1, 1]} : vector<8x128xf32> to vector<8x32xf32>
    %352 = math.tanh %351 : vector<8x32xf32>
    %353 = vector.extract_strided_slice %338 {offsets = [0, 96], sizes = [8, 32], strides = [1, 1]} : vector<8x128xf32> to vector<8x32xf32>
    %354 = arith.negf %353 : vector<8x32xf32>
    %355 = math.exp %354 : vector<8x32xf32>
    %cst_104 = arith.constant 1.000000e+00 : f32
    %356 = vector.broadcast %cst_104 : f32 to vector<8x32xf32>
    %357 = arith.addf %356, %355 : vector<8x32xf32>
    %358 = arith.divf %356, %357 : vector<8x32xf32>
    %359 = arith.mulf %350, %333 : vector<8x32xf32>
    %360 = arith.mulf %344, %352 : vector<8x32xf32>
    %361 = arith.addf %359, %360 : vector<8x32xf32>
    %362 = math.tanh %361 : vector<8x32xf32>
    %363 = arith.mulf %358, %362 : vector<8x32xf32>
    %c32_105 = arith.constant 32 : index
    %c0_106 = arith.constant 0 : index
    %364 = vector.load %arg11[%c32_105, %c0_106] : memref<64x128xf32, #tpu.memory_space<vmem>>, vector<8x128xf32>
    %cst_107 = arith.constant dense<0.000000e+00> : vector<8x128xf32>
    %365 = tpu.matmul %363, %249, %cst_107 {dimension_numbers = #tpu.dot_dimension_numbers<[1], [0], [0], [1], [0, 0, 1, 1], [], []>} : vector<8x32xf32>, vector<32x128xf32>, vector<8x128xf32> -> vector<8x128xf32>
    %366 = arith.addf %364, %365 : vector<8x128xf32>
    %367 = vector.extract_strided_slice %366 {offsets = [0, 0], sizes = [8, 32], strides = [1, 1]} : vector<8x128xf32> to vector<8x32xf32>
    %368 = arith.negf %367 : vector<8x32xf32>
    %369 = math.exp %368 : vector<8x32xf32>
    %cst_108 = arith.constant 1.000000e+00 : f32
    %370 = vector.broadcast %cst_108 : f32 to vector<8x32xf32>
    %371 = arith.addf %370, %369 : vector<8x32xf32>
    %372 = arith.divf %370, %371 : vector<8x32xf32>
    %373 = vector.extract_strided_slice %366 {offsets = [0, 32], sizes = [8, 32], strides = [1, 1]} : vector<8x128xf32> to vector<8x32xf32>
    %374 = arith.negf %373 : vector<8x32xf32>
    %375 = math.exp %374 : vector<8x32xf32>
    %cst_109 = arith.constant 1.000000e+00 : f32
    %376 = vector.broadcast %cst_109 : f32 to vector<8x32xf32>
    %377 = arith.addf %376, %375 : vector<8x32xf32>
    %378 = arith.divf %376, %377 : vector<8x32xf32>
    %379 = vector.extract_strided_slice %366 {offsets = [0, 64], sizes = [8, 32], strides = [1, 1]} : vector<8x128xf32> to vector<8x32xf32>
    %380 = math.tanh %379 : vector<8x32xf32>
    %381 = vector.extract_strided_slice %366 {offsets = [0, 96], sizes = [8, 32], strides = [1, 1]} : vector<8x128xf32> to vector<8x32xf32>
    %382 = arith.negf %381 : vector<8x32xf32>
    %383 = math.exp %382 : vector<8x32xf32>
    %cst_110 = arith.constant 1.000000e+00 : f32
    %384 = vector.broadcast %cst_110 : f32 to vector<8x32xf32>
    %385 = arith.addf %384, %383 : vector<8x32xf32>
    %386 = arith.divf %384, %385 : vector<8x32xf32>
    %387 = arith.mulf %378, %361 : vector<8x32xf32>
    %388 = arith.mulf %372, %380 : vector<8x32xf32>
    %389 = arith.addf %387, %388 : vector<8x32xf32>
    %390 = math.tanh %389 : vector<8x32xf32>
    %391 = arith.mulf %386, %390 : vector<8x32xf32>
    %c40_111 = arith.constant 40 : index
    %c0_112 = arith.constant 0 : index
    %392 = vector.load %arg11[%c40_111, %c0_112] : memref<64x128xf32, #tpu.memory_space<vmem>>, vector<8x128xf32>
    %cst_113 = arith.constant dense<0.000000e+00> : vector<8x128xf32>
    %393 = tpu.matmul %391, %249, %cst_113 {dimension_numbers = #tpu.dot_dimension_numbers<[1], [0], [0], [1], [0, 0, 1, 1], [], []>} : vector<8x32xf32>, vector<32x128xf32>, vector<8x128xf32> -> vector<8x128xf32>
    %394 = arith.addf %392, %393 : vector<8x128xf32>
    %395 = vector.extract_strided_slice %394 {offsets = [0, 0], sizes = [8, 32], strides = [1, 1]} : vector<8x128xf32> to vector<8x32xf32>
    %396 = arith.negf %395 : vector<8x32xf32>
    %397 = math.exp %396 : vector<8x32xf32>
    %cst_114 = arith.constant 1.000000e+00 : f32
    %398 = vector.broadcast %cst_114 : f32 to vector<8x32xf32>
    %399 = arith.addf %398, %397 : vector<8x32xf32>
    %400 = arith.divf %398, %399 : vector<8x32xf32>
    %401 = vector.extract_strided_slice %394 {offsets = [0, 32], sizes = [8, 32], strides = [1, 1]} : vector<8x128xf32> to vector<8x32xf32>
    %402 = arith.negf %401 : vector<8x32xf32>
    %403 = math.exp %402 : vector<8x32xf32>
    %cst_115 = arith.constant 1.000000e+00 : f32
    %404 = vector.broadcast %cst_115 : f32 to vector<8x32xf32>
    %405 = arith.addf %404, %403 : vector<8x32xf32>
    %406 = arith.divf %404, %405 : vector<8x32xf32>
    %407 = vector.extract_strided_slice %394 {offsets = [0, 64], sizes = [8, 32], strides = [1, 1]} : vector<8x128xf32> to vector<8x32xf32>
    %408 = math.tanh %407 : vector<8x32xf32>
    %409 = vector.extract_strided_slice %394 {offsets = [0, 96], sizes = [8, 32], strides = [1, 1]} : vector<8x128xf32> to vector<8x32xf32>
    %410 = arith.negf %409 : vector<8x32xf32>
    %411 = math.exp %410 : vector<8x32xf32>
    %cst_116 = arith.constant 1.000000e+00 : f32
    %412 = vector.broadcast %cst_116 : f32 to vector<8x32xf32>
    %413 = arith.addf %412, %411 : vector<8x32xf32>
    %414 = arith.divf %412, %413 : vector<8x32xf32>
    %415 = arith.mulf %406, %389 : vector<8x32xf32>
    %416 = arith.mulf %400, %408 : vector<8x32xf32>
    %417 = arith.addf %415, %416 : vector<8x32xf32>
    %418 = math.tanh %417 : vector<8x32xf32>
    %419 = arith.mulf %414, %418 : vector<8x32xf32>
    %c48_117 = arith.constant 48 : index
    %c0_118 = arith.constant 0 : index
    %420 = vector.load %arg11[%c48_117, %c0_118] : memref<64x128xf32, #tpu.memory_space<vmem>>, vector<8x128xf32>
    %cst_119 = arith.constant dense<0.000000e+00> : vector<8x128xf32>
    %421 = tpu.matmul %419, %249, %cst_119 {dimension_numbers = #tpu.dot_dimension_numbers<[1], [0], [0], [1], [0, 0, 1, 1], [], []>} : vector<8x32xf32>, vector<32x128xf32>, vector<8x128xf32> -> vector<8x128xf32>
    %422 = arith.addf %420, %421 : vector<8x128xf32>
    %423 = vector.extract_strided_slice %422 {offsets = [0, 0], sizes = [8, 32], strides = [1, 1]} : vector<8x128xf32> to vector<8x32xf32>
    %424 = arith.negf %423 : vector<8x32xf32>
    %425 = math.exp %424 : vector<8x32xf32>
    %cst_120 = arith.constant 1.000000e+00 : f32
    %426 = vector.broadcast %cst_120 : f32 to vector<8x32xf32>
    %427 = arith.addf %426, %425 : vector<8x32xf32>
    %428 = arith.divf %426, %427 : vector<8x32xf32>
    %429 = vector.extract_strided_slice %422 {offsets = [0, 32], sizes = [8, 32], strides = [1, 1]} : vector<8x128xf32> to vector<8x32xf32>
    %430 = arith.negf %429 : vector<8x32xf32>
    %431 = math.exp %430 : vector<8x32xf32>
    %cst_121 = arith.constant 1.000000e+00 : f32
    %432 = vector.broadcast %cst_121 : f32 to vector<8x32xf32>
    %433 = arith.addf %432, %431 : vector<8x32xf32>
    %434 = arith.divf %432, %433 : vector<8x32xf32>
    %435 = vector.extract_strided_slice %422 {offsets = [0, 64], sizes = [8, 32], strides = [1, 1]} : vector<8x128xf32> to vector<8x32xf32>
    %436 = math.tanh %435 : vector<8x32xf32>
    %437 = vector.extract_strided_slice %422 {offsets = [0, 96], sizes = [8, 32], strides = [1, 1]} : vector<8x128xf32> to vector<8x32xf32>
    %438 = arith.negf %437 : vector<8x32xf32>
    %439 = math.exp %438 : vector<8x32xf32>
    %cst_122 = arith.constant 1.000000e+00 : f32
    %440 = vector.broadcast %cst_122 : f32 to vector<8x32xf32>
    %441 = arith.addf %440, %439 : vector<8x32xf32>
    %442 = arith.divf %440, %441 : vector<8x32xf32>
    %443 = arith.mulf %434, %417 : vector<8x32xf32>
    %444 = arith.mulf %428, %436 : vector<8x32xf32>
    %445 = arith.addf %443, %444 : vector<8x32xf32>
    %446 = math.tanh %445 : vector<8x32xf32>
    %447 = arith.mulf %442, %446 : vector<8x32xf32>
    %c56_123 = arith.constant 56 : index
    %c0_124 = arith.constant 0 : index
    %448 = vector.load %arg11[%c56_123, %c0_124] : memref<64x128xf32, #tpu.memory_space<vmem>>, vector<8x128xf32>
    %cst_125 = arith.constant dense<0.000000e+00> : vector<8x128xf32>
    %449 = tpu.matmul %447, %249, %cst_125 {dimension_numbers = #tpu.dot_dimension_numbers<[1], [0], [0], [1], [0, 0, 1, 1], [], []>} : vector<8x32xf32>, vector<32x128xf32>, vector<8x128xf32> -> vector<8x128xf32>
    %450 = arith.addf %448, %449 : vector<8x128xf32>
    %451 = vector.extract_strided_slice %450 {offsets = [0, 0], sizes = [8, 32], strides = [1, 1]} : vector<8x128xf32> to vector<8x32xf32>
    %452 = arith.negf %451 : vector<8x32xf32>
    %453 = math.exp %452 : vector<8x32xf32>
    %cst_126 = arith.constant 1.000000e+00 : f32
    %454 = vector.broadcast %cst_126 : f32 to vector<8x32xf32>
    %455 = arith.addf %454, %453 : vector<8x32xf32>
    %456 = arith.divf %454, %455 : vector<8x32xf32>
    %457 = vector.extract_strided_slice %450 {offsets = [0, 32], sizes = [8, 32], strides = [1, 1]} : vector<8x128xf32> to vector<8x32xf32>
    %458 = arith.negf %457 : vector<8x32xf32>
    %459 = math.exp %458 : vector<8x32xf32>
    %cst_127 = arith.constant 1.000000e+00 : f32
    %460 = vector.broadcast %cst_127 : f32 to vector<8x32xf32>
    %461 = arith.addf %460, %459 : vector<8x32xf32>
    %462 = arith.divf %460, %461 : vector<8x32xf32>
    %463 = vector.extract_strided_slice %450 {offsets = [0, 64], sizes = [8, 32], strides = [1, 1]} : vector<8x128xf32> to vector<8x32xf32>
    %464 = math.tanh %463 : vector<8x32xf32>
    %465 = vector.extract_strided_slice %450 {offsets = [0, 96], sizes = [8, 32], strides = [1, 1]} : vector<8x128xf32> to vector<8x32xf32>
    %466 = arith.negf %465 : vector<8x32xf32>
    %467 = math.exp %466 : vector<8x32xf32>
    %cst_128 = arith.constant 1.000000e+00 : f32
    %468 = vector.broadcast %cst_128 : f32 to vector<8x32xf32>
    %469 = arith.addf %468, %467 : vector<8x32xf32>
    %470 = arith.divf %468, %469 : vector<8x32xf32>
    %471 = arith.mulf %462, %445 : vector<8x32xf32>
    %472 = arith.mulf %456, %464 : vector<8x32xf32>
    %473 = arith.addf %471, %472 : vector<8x32xf32>
    %474 = math.tanh %473 : vector<8x32xf32>
    %475 = arith.mulf %470, %474 : vector<8x32xf32>
    %c0_129 = arith.constant 0 : index
    %c0_130 = arith.constant 0 : index
    %476 = vector.load %arg8[%c0_129, %c0_130] : memref<32x4xf32, #tpu.memory_space<vmem>>, vector<32x4xf32>
    %cst_131 = arith.constant dense<0.000000e+00> : vector<8x4xf32>
    %477 = tpu.matmul %475, %476, %cst_131 {dimension_numbers = #tpu.dot_dimension_numbers<[1], [0], [0], [1], [0, 0, 1, 1], [], []>} : vector<8x32xf32>, vector<32x4xf32>, vector<8x4xf32> -> vector<8x4xf32>
    %c0_132 = arith.constant 0 : index
    %c0_133 = arith.constant 0 : index
    %478 = vector.load %arg9[%c0_132, %c0_133] : memref<1x4xf32, #tpu.memory_space<vmem>>, vector<1x4xf32>
    %479 = vector.broadcast %478 : vector<1x4xf32> to vector<8x4xf32>
    %480 = arith.addf %477, %479 : vector<8x4xf32>
    %c0_134 = arith.constant 0 : index
    %c0_135 = arith.constant 0 : index
    %481 = vector.load %arg10[%c0_134, %c0_135] : memref<8x4xf32, #tpu.memory_space<vmem>>, vector<8x4xf32>
    tpu.vector_store %arg10[%c0_134, %c0_135], %480 {strides = array<i32>} : memref<8x4xf32, #tpu.memory_space<vmem>>, vector<8x4xf32>,
    return
  }
  func.func @transform_0(%arg0: i32) -> (i32, i32) {
    %c0_i32 = arith.constant 0 : i32
    %c0_i32_0 = arith.constant 0 : i32
    %c0_i32_1 = arith.constant 0 : i32
    return %c0_i32, %c0_i32_0 : i32, i32
  }
  func.func @transform_1(%arg0: i32) -> (i32, i32) {
    %c0_i32 = arith.constant 0 : i32
    %c0_i32_0 = arith.constant 0 : i32
    %c0_i32_1 = arith.constant 0 : i32
    return %c0_i32, %c0_i32_0 : i32, i32
  }
  func.func @transform_2(%arg0: i32) -> (i32, i32) {
    %c0_i32 = arith.constant 0 : i32
    %c0_i32_0 = arith.constant 0 : i32
    %c0_i32_1 = arith.constant 0 : i32
    return %c0_i32, %c0_i32_0 : i32, i32
  }
  func.func @transform_3(%arg0: i32) -> (i32, i32) {
    %c0_i32 = arith.constant 0 : i32
    %c0_i32_0 = arith.constant 0 : i32
    %c0_i32_1 = arith.constant 0 : i32
    return %c0_i32, %c0_i32_0 : i32, i32
  }
  func.func @transform_4(%arg0: i32) -> (i32, i32) {
    %c0_i32 = arith.constant 0 : i32
    %c0_i32_0 = arith.constant 0 : i32
    %c0_i32_1 = arith.constant 0 : i32
    return %c0_i32, %c0_i32_0 : i32, i32
  }
  func.func @transform_5(%arg0: i32) -> (i32, i32) {
    %c0_i32 = arith.constant 0 : i32
    %c0_i32_0 = arith.constant 0 : i32
    %c0_i32_1 = arith.constant 0 : i32
    return %c0_i32, %c0_i32_0 : i32, i32
  }
  func.func @transform_6(%arg0: i32) -> (i32, i32) {
    %c0_i32 = arith.constant 0 : i32
    %c0_i32_0 = arith.constant 0 : i32
    %c0_i32_1 = arith.constant 0 : i32
    return %c0_i32, %c0_i32_0 : i32, i32
  }
  func.func @transform_7(%arg0: i32) -> (i32, i32) {
    %c0_i32 = arith.constant 0 : i32
    %c0_i32_0 = arith.constant 0 : i32
    %c0_i32_1 = arith.constant 0 : i32
    return %c0_i32, %c0_i32_0 : i32, i32
  }
  func.func @transform_8(%arg0: i32) -> (i32, i32) {
    %c0_i32 = arith.constant 0 : i32
    %c0_i32_0 = arith.constant 0 : i32
    %c0_i32_1 = arith.constant 0 : i32
    return %c0_i32, %c0_i32_0 : i32, i32
  }
  func.func @transform_9(%arg0: i32) -> (i32, i32) {
    %c0_i32 = arith.constant 0 : i32
    %c0_i32_0 = arith.constant 0 : i32
    %c0_i32_1 = arith.constant 0 : i32
    return %c0_i32, %c0_i32_0 : i32, i32
  }
}

</mosaic_0001>

<bundles_post_ra>
// kernel: net_forward.1
= control target key start
LH: loop header
LB: loop body
LE: loop exit
PB: predicated region body
PF: predicated region fallthrough
CT: control target
= control target key end

     0   :  { %vm49_vm0 = vcmask 130048   ;;  %v2699_v0 = vmov 0.0|0.0   ;;  %vm2700_vm1 = vmmov 0   ;;  %v2701_v4 = vmov 0.0   ;;  %s2702_s25 = smov 64   ;;  %s3114_s1 = inlined_call_operand.vmem [shape: f32[16,128], index: 1, kind: input, shape index: {}]   ;;  %s3115_s2 = inlined_call_operand.vmem [shape: f32[32,128], index: 2, kind: input, shape index: {}]   ;;  %s3116_s0 = inlined_call_operand.vmem [shape: f32[64,16], index: 0, kind: input, shape index: {}]   ;;  %s3117_s3 = inlined_call_operand.vmem [shape: f32[1,128], index: 3, kind: input, shape index: {}]   ;;  %s3118_s4 = inlined_call_operand.vmem [shape: f32[32,128], index: 4, kind: input, shape index: {}]   ;;  %s3119_s5 = inlined_call_operand.vmem [shape: f32[32,128], index: 5, kind: input, shape index: {}]   ;;  %s3120_s6 = inlined_call_operand.vmem [shape: f32[1,128], index: 6, kind: input, shape index: {}]   ;;  %s3121_s7 = inlined_call_operand.vmem [shape: f32[32,4], index: 7, kind: input, shape index: {}]   ;;  %s3122_s8 = inlined_call_operand.vmem [shape: f32[1,4], index: 8, kind: input, shape index: {}]   ;;  %s3123_s9 = inlined_call_operand.vmem [shape: f32[8,4], index: 9, kind: output, shape index: {}]  }
   0x1   :  { %2456 = vmatprep.subr.bf16.mxu1 %v2699_v0  ;;  %v40_v1 = vld [vmem:[%s3114_s1] sm:$0xff]  ;;  %v41_v2 = vld [vmem:[%s3114_s1 + $0x8] sm:$0xff]  ;;  %2253 = vmatprep.mubr.msk.f32.mxu1 %vm2700_vm1, %v2701_v4  ;;  %v189_v9 = vld [vmem:[%s3115_s2 + $0x10] sm:$0xff]  ;;  %vm192_vm2 = vcmask 261120   ;;  %vm2066_vm3 = vcmask 31744  }
   0x2   :  { %v187_v3 = vld [vmem:[%s3115_s2] sm:$0xff]  ;;  %v2452_v5 = vpack.c.bf16 %v41_v2, %v40_v1  ;;  %v188_v6 = vld [vmem:[%s3115_s2 + $0x8] sm:$0xff]  ;;  %v190_v10 = vld [vmem:[%s3115_s2 + $0x18] sm:$0xff] }
   0x3   :  { %v32_v7 = vld [vmem:[%s3116_s0] sm:$0xff]  ;;  %v2772_v8 = vpack.c.bf16 %v188_v6, %v187_v3  ;;  %v33_v11 = vld [vmem:[%s3116_s0 + $0x8] sm:$0xff]  ;;  %v2785_v12 = vpack.c.bf16 %v190_v10, %v189_v9  ;;  %v34_v48 = vld [vmem:[%s3116_s0 + $0x10] sm:$0xff] }
   0x4   :  { %2233 = vmatprep.mubr.msk.f32.mxu0 %vm49_vm0, %v32_v7  ;;  %2453 = vmatprep.subr.bf16.mxu0 %v2452_v5  ;;  %v2806_v13 = vld [vmem:[%s3117_s3] ss:$0 sm:$0xff]  ;;  %s2703_s3 = smov 32   ;;  %v35_v49 = vld [vmem:[%s3116_s0 + $0x18] sm:$0xff]  ;;  %v37_v51 = vld [vmem:[%s3116_s0 + $0x28] sm:$0xff] }
   0x5   :  { %2458 = vmatpush3.bf16.msra.mxu1 %v2772_v8  ;;  %2455 = vmatpush3.bf16.msra.mxu0 %v2452_v5  ;;  %v36_v50 = vld [vmem:[%s3116_s0 + $0x20] sm:$0xff]  ;;  %v38_v52 = vld [vmem:[%s3116_s0 + $0x30] sm:$0xff]  ;;  %v39_v53 = vld [vmem:[%s3116_s0 + $0x38] sm:$0xff] }
   0x6   :  { %2459 = vmatprep.subr.bf16.mxu1 %v2699_v0  ;;  %2468 = vmatprep.subr.bf16.mxu0 %v2699_v0 }
   0x8   :  { %2234 = vmatmul.mubr.msk.f32.vlgmr.msra.gmra.mrb[0].mxu0 %vm49_vm0, %v33_v11 }
   0x9   :  { %2461 = vmatpush3.bf16.msra.mxu1 %v2785_v12  ;;  %2470 = vmatpush3.bf16.msra.mxu0 %v2772_v8 }
   0xa   :  { %2462 = vmatprep.subr.bf16.mxu1 %v2699_v0  ;;  %2471 = vmatprep.subr.bf16.mxu0 %v2699_v0 }
   0xb   :  { %2236 = vmatprep.mubr.msk.f32.mxu0 %vm49_vm0, %v34_v48 }
   0xc   :  { %2254 = vmatmul.mubr.f32.vlgmr.msra.gmra.mrb[0].mxu1 %v2701_v4  ;;  %2237 = vmatmul.mubr.msk.f32.gmra.mrb[2].mxu0 %vm49_vm0, %v35_v49 }
   0xd   :  { %2464 = vmatpush3.bf16.msra.mxu1 %v2772_v8  ;;  %2264 = vmatprep.mubr.msk.f32.mxu1 %vm2700_vm1, %v2701_v4 }
   0xe   :  { %2465 = vmatprep.subr.bf16.mxu1 %v2699_v0  ;;  %2473 = vmatpush3.bf16.msra.mxu0 %v2785_v12 }
   0xf   :  { %2480 = vmatprep.subr.bf16.mxu0 %v2699_v0  ;;  %2239 = vmatprep.mubr.msk.f32.mxu0 %vm49_vm0, %v36_v50 }
  0x10   :  { %2240 = vmatmul.mubr.msk.f32.gmra.mrb[4].mxu0 %vm49_vm0, %v37_v51 }
  0x11   :  { %2467 = vmatpush3.bf16.msra.mxu1 %v2785_v12  ;;  %2242 = vmatprep.mubr.msk.f32.mxu0 %vm49_vm0, %v38_v52 }
  0x12   :  { %2474 = vmatprep.subr.bf16.mxu1 %v2699_v0 }
  0x14   :  { %2243 = vmatmul.mubr.msk.f32.gmra.mrb[6].mxu0 %vm49_vm0, %v39_v53 }
  0x15   :  { %2275 = vmatprep.mubr.msk.f32.mxu0 %vm2700_vm1, %v2701_v4 }
  0xdb   :  { %v2235_v14 = vpop.f32.mrb[0].mxu0 }
  0xdc   :  { %v140_v15 = vpop.f32.mrb[1].mxu0  ;;  %v146_v34 = vadd.f32 %v2235_v14, %v2806_v13 }
  0xdd   :  { %v141_v16 = vadd.f32 %v2806_v13, %v140_v15 }
  0xdf   :  { %v262_v17 = vpop.f32.mrb[0].mxu1  ;;  %v2238_v57 = vpop.f32.mrb[2].mxu0 }
  0xe0   :  { %v266_v18 = vadd.f32 %v262_v17, %v141_v16  ;;  %v2255_v19 = vpop.f32.mrb[1].mxu1  ;;  %v150_v58 = vpop.f32.mrb[3].mxu0 }
  0xe1   :  { %v151_v1 = vadd.f32 %v2806_v13, %v150_v58 }
  0xe2   :  { %2571 = vtanh.f32 %v266_v18  ;;  %v2081_v21 = vmul.f32 -1.442695, %v266_v18 }
  0xe3   :  { %v2852_v59 = vpop.f32.mrb[4].mxu0 }
  0xe4   :  { %2573 = vpow2.f32 %v2081_v21  ;;  %v2854_v60 = vpop.f32.mrb[5].mxu0 }
  0xe7   :  { %v2856_v61 = vpop.f32.mrb[6].mxu0 }
  0xe8   :  { %v2858_v62 = vpop.f32.mrb[7].mxu0 }
  0xec   :  { %v2572_v20 = vpop.eup %2571 }
  0xed   :  { %276 = vrot.lane.b32.xlu0 %v2572_v20, %s2702_s25 }
  0xee   :  { %v2574_v22 = vpop.eup %2573 }
  0xef   :  { %v270_v23 = vadd.f32 1.0, %v2574_v22 }
  0xf1   :  { %2575 = vrcp.f32 %v270_v23  ;;  %v156_v23 = vadd.f32 %v2238_v57, %v2806_v13 }
  0xfb   :  { %v2576_v24 = vpop.eup %2575 }
  0xfc   :  { %v274_v27 = vmul.f32 0.0, %v2576_v24 }
 0x15f   :  { %v277_v25 = vpop.permute.xlu0 %276 }
 0x160   :  { %v279_v26 = vmul.f32 %v2576_v24, %v277_v25 }
 0x162   :  { %281 = vrot.lane.b32.xlu0 %v279_v26, %s2703_s3 }
 0x1d4   :  { %v282_v28 = vpop.permute.xlu0 %281 }
 0x1d5   :  { %v284_v29 = vadd.f32 %v282_v28, %v274_v27 }
 0x1d7   :  { %2577 = vtanh.f32 %v284_v29 }
 0x1e1   :  { %v2578_v30 = vpop.eup %2577 }
 0x1e2   :  { %287 = vrot.lane.b32.xlu1 %v2578_v30, %s2702_s25 }
 0x254   :  { %v288_v31 = vpop.permute.xlu1 %287 }
 0x255   :  { %v290_v32 = vmul.f32 %v2576_v24, %v288_v31 }
 0x257   :  { %292 = vrot.lane.b32.xlu1 %v290_v32, %s2703_s3 }
 0x2c9   :  { %v293_v33 = vpop.permute.xlu1 %292 }
 0x2ca   :  { %295 = vst.msk [vmem:[#allocation3] sm:$0xff] %vm192_vm2, %v293_v33  ;;  %2265 = vmatmul.mubr.msk.f32.vlgmr.msra.gmra.mrb[2].mxu1 %vm192_vm2, %v293_v33 }
 0x2cb   :  { %2476 = vmatpush3.bf16.msra.mxu1 %v2772_v8  ;;  %2286 = vmatprep.mubr.msk.f32.mxu1 %vm2700_vm1, %v2701_v4 }
 0x2cc   :  { %2477 = vmatprep.subr.bf16.mxu1 %v2699_v0 }
 0x2cf   :  { %2479 = vmatpush3.bf16.msra.mxu1 %v2785_v12 }
 0x2d0   :  { %2486 = vmatprep.subr.bf16.mxu1 %v2699_v0 }
 0x39d   :  { %v365_v35 = vpop.f32.mrb[2].mxu1 }
 0x39e   :  { %v369_v36 = vadd.f32 %v365_v35, %v146_v34  ;;  %v2266_v37 = vpop.f32.mrb[3].mxu1 }
 0x3a0   :  { %2579 = vtanh.f32 %v369_v36  ;;  %v2083_v39 = vmul.f32 -1.442695, %v369_v36 }
 0x3a2   :  { %2581 = vpow2.f32 %v2083_v39 }
 0x3aa   :  { %v2580_v38 = vpop.eup %2579 }
 0x3ab   :  { %379 = vrot.lane.b32.xlu0 %v2580_v38, %s2702_s25 }
 0x3ac   :  { %v2582_v40 = vpop.eup %2581 }
 0x3ad   :  { %v373_v41 = vadd.f32 1.0, %v2582_v40 }
 0x3af   :  { %2583 = vrcp.f32 %v373_v41  ;;  %v161_v41 = vadd.f32 %v2806_v13, %v2854_v60  ;;  %v166_v60 = vadd.f32 %v2852_v59, %v2806_v13 }
 0x3b9   :  { %v2584_v42 = vpop.eup %2583 }
 0x3ba   :  { %v377_v45 = vmul.f32 %v2584_v42, %v284_v29 }
 0x41d   :  { %v380_v43 = vpop.permute.xlu0 %379 }
 0x41e   :  { %v382_v44 = vmul.f32 %v2584_v42, %v380_v43 }
 0x420   :  { %384 = vrot.lane.b32.xlu1 %v382_v44, %s2703_s3 }
 0x492   :  { %v385_v46 = vpop.permute.xlu1 %384 }
 0x493   :  { %v387_v47 = vadd.f32 %v385_v46, %v377_v45 }
 0x495   :  { %2585 = vtanh.f32 %v387_v47 }
 0x49f   :  { %v2586_v54 = vpop.eup %2585 }
 0x4a0   :  { %390 = vrot.lane.b32.xlu0 %v2586_v54, %s2702_s25 }
 0x512   :  { %v391_v55 = vpop.permute.xlu0 %390 }
 0x513   :  { %v393_v56 = vmul.f32 %v2584_v42, %v391_v55 }
 0x515   :  { %395 = vrot.lane.b32.xlu1 %v393_v56, %s2703_s3 }
 0x587   :  { %v396_v63 = vpop.permute.xlu1 %395 }
 0x588   :  { %398 = vst.msk [vmem:[#allocation3 + $0x8] sm:$0xff] %vm192_vm2, %v396_v63  ;;  %2276 = vmatmul.mubr.msk.f32.vlgmr.msra.gmra.mrb[8].mxu0 %vm192_vm2, %v396_v63 }
 0x589   :  { %2482 = vmatpush3.bf16.msra.mxu0 %v2772_v8  ;;  %2297 = vmatprep.mubr.msk.f32.mxu0 %vm2700_vm1, %v2701_v4 }
 0x58a   :  { %2483 = vmatprep.subr.bf16.mxu0 %v2699_v0 }
 0x58d   :  { %2485 = vmatpush3.bf16.msra.mxu0 %v2785_v12 }
 0x58e   :  { %2492 = vmatprep.subr.bf16.mxu0 %v2699_v0 }
 0x65b   :  { %v468_v2 = vpop.f32.mrb[8].mxu0 }
 0x65c   :  { %v472_v3 = vadd.f32 %v468_v2, %v151_v1  ;;  %v2277_v5 = vpop.f32.mrb[9].mxu0 }
 0x65e   :  { %2587 = vtanh.f32 %v472_v3  ;;  %v2085_v7 = vmul.f32 -1.442695, %v472_v3 }
 0x660   :  { %2589 = vpow2.f32 %v2085_v7 }
 0x668   :  { %v2588_v6 = vpop.eup %2587 }
 0x669   :  { %482 = vrot.lane.b32.xlu0 %v2588_v6, %s2702_s25 }
 0x66a   :  { %v2590_v9 = vpop.eup %2589 }
 0x66b   :  { %v476_v10 = vadd.f32 1.0, %v2590_v9 }
 0x66d   :  { %2591 = vrcp.f32 %v476_v10 }
 0x677   :  { %v2592_v11 = vpop.eup %2591 }
 0x678   :  { %v480_v16 = vmul.f32 %v2592_v11, %v387_v47 }
 0x6db   :  { %v483_v14 = vpop.permute.xlu0 %482 }
 0x6dc   :  { %v485_v15 = vmul.f32 %v2592_v11, %v483_v14  ;;  %v1025_v14 = vld [vmem:[%s3118_s4] sm:$0xff] }
 0x6de   :  { %487 = vrot.lane.b32.xlu1 %v485_v15, %s2703_s3  ;;  %v1026_v15 = vld [vmem:[%s3118_s4 + $0x8] sm:$0xff] }
 0x750   :  { %v488_v17 = vpop.permute.xlu1 %487 }
 0x751   :  { %v490_v18 = vadd.f32 %v488_v17, %v480_v16  ;;  %v2504_v16 = vpack.c.bf16 %v1026_v15, %v1025_v14 }
 0x753   :  { %2593 = vtanh.f32 %v490_v18 }
 0x75d   :  { %v2594_v19 = vpop.eup %2593 }
 0x75e   :  { %493 = vrot.lane.b32.xlu0 %v2594_v19, %s2702_s25 }
 0x7d0   :  { %v494_v20 = vpop.permute.xlu0 %493 }
 0x7d1   :  { %v496_v21 = vmul.f32 %v2592_v11, %v494_v20  ;;  %v1027_v20 = vld [vmem:[%s3118_s4 + $0x10] sm:$0xff] }
 0x7d3   :  { %498 = vrot.lane.b32.xlu1 %v496_v21, %s2703_s3  ;;  %v1028_v21 = vld [vmem:[%s3118_s4 + $0x18] sm:$0xff] }
 0x845   :  { %v499_v22 = vpop.permute.xlu1 %498 }
 0x846   :  { %501 = vst.msk [vmem:[#allocation3 + $0x10] sm:$0xff] %vm192_vm2, %v499_v22  ;;  %2287 = vmatmul.mubr.msk.f32.vlgmr.msra.gmra.mrb[4].mxu1 %vm192_vm2, %v499_v22  ;;  %v2508_v22 = vpack.c.bf16 %v1028_v21, %v1027_v20 }
 0x847   :  { %2488 = vmatpush3.bf16.msra.mxu1 %v2772_v8  ;;  %2308 = vmatprep.mubr.msk.f32.mxu1 %vm2700_vm1, %v2701_v4 }
 0x848   :  { %2489 = vmatprep.subr.bf16.mxu1 %v2699_v0 }
 0x84b   :  { %2491 = vmatpush3.bf16.msra.mxu1 %v2785_v12 }
 0x84c   :  { %2498 = vmatprep.subr.bf16.mxu1 %v2699_v0 }
 0x919   :  { %v571_v24 = vpop.f32.mrb[4].mxu1 }
 0x91a   :  { %v575_v25 = vadd.f32 %v571_v24, %v156_v23  ;;  %v2288_v26 = vpop.f32.mrb[5].mxu1  ;;  %v1017_v24 = vld [vmem:[#allocation3] sm:$0xff] }
 0x91b   :  { %v1019_v26 = vld [vmem:[#allocation3 + $0x10] sm:$0xff] }
 0x91c   :  { %2595 = vtanh.f32 %v575_v25  ;;  %v2087_v28 = vmul.f32 -1.442695, %v575_v25  ;;  %v1018_v25 = vld [vmem:[#allocation3 + $0x8] sm:$0xff] }
 0x91e   :  { %2597 = vpow2.f32 %v2087_v28 }
 0x926   :  { %v2596_v27 = vpop.eup %2595 }
 0x927   :  { %585 = vrot.lane.b32.xlu0 %v2596_v27, %s2702_s25 }
 0x928   :  { %v2598_v29 = vpop.eup %2597 }
 0x929   :  { %v579_v30 = vadd.f32 1.0, %v2598_v29 }
 0x92b   :  { %2599 = vrcp.f32 %v579_v30  ;;  %v171_v30 = vadd.f32 %v2806_v13, %v2858_v62 }
 0x935   :  { %v2600_v31 = vpop.eup %2599 }
 0x936   :  { %v583_v34 = vmul.f32 %v2600_v31, %v490_v18 }
 0x999   :  { %v586_v32 = vpop.permute.xlu0 %585 }
 0x99a   :  { %v588_v33 = vmul.f32 %v2600_v31, %v586_v32 }
 0x99c   :  { %590 = vrot.lane.b32.xlu1 %v588_v33, %s2703_s3 }
 0xa0e   :  { %v591_v35 = vpop.permute.xlu1 %590 }
 0xa0f   :  { %v593_v36 = vadd.f32 %v591_v35, %v583_v34 }
 0xa11   :  { %2601 = vtanh.f32 %v593_v36 }
 0xa1b   :  { %v2602_v37 = vpop.eup %2601 }
 0xa1c   :  { %596 = vrot.lane.b32.xlu0 %v2602_v37, %s2702_s25 }
 0xa8e   :  { %v597_v38 = vpop.permute.xlu0 %596 }
 0xa8f   :  { %v599_v39 = vmul.f32 %v2600_v31, %v597_v38 }
 0xa91   :  { %601 = vrot.lane.b32.xlu1 %v599_v39, %s2703_s3 }
 0xb03   :  { %v602_v40 = vpop.permute.xlu1 %601 }
 0xb04   :  { %604 = vst.msk [vmem:[#allocation3 + $0x18] sm:$0xff] %vm192_vm2, %v602_v40  ;;  %2298 = vmatmul.mubr.msk.f32.vlgmr.msra.gmra.mrb[10].mxu0 %vm192_vm2, %v602_v40 }
 0xb05   :  { %2494 = vmatpush3.bf16.msra.mxu0 %v2772_v8  ;;  %2319 = vmatprep.mubr.msk.f32.mxu0 %vm2700_vm1, %v2701_v4 }
 0xb06   :  { %2495 = vmatprep.subr.bf16.mxu0 %v2699_v0 }
 0xb09   :  { %2497 = vmatpush3.bf16.msra.mxu0 %v2785_v12 }
 0xb0a   :  { %2505 = vmatprep.subr.bf16.mxu0 %v2504_v16 }
 0xb0b   :  { %v1020_v27 = vld [vmem:[#allocation3 + $0x18] sm:$0xff] }
 0xbd7   :  { %v674_v42 = vpop.f32.mrb[10].mxu0 }
 0xbd8   :  { %v678_v43 = vadd.f32 %v674_v42, %v161_v41  ;;  %v2299_v44 = vpop.f32.mrb[11].mxu0 }
 0xbda   :  { %2603 = vtanh.f32 %v678_v43  ;;  %v2089_v46 = vmul.f32 -1.442695, %v678_v43 }
 0xbdc   :  { %2605 = vpow2.f32 %v2089_v46 }
 0xbe4   :  { %v2604_v45 = vpop.eup %2603 }
 0xbe5   :  { %688 = vrot.lane.b32.xlu0 %v2604_v45, %s2702_s25 }
 0xbe6   :  { %v2606_v47 = vpop.eup %2605 }
 0xbe7   :  { %v682_v48 = vadd.f32 1.0, %v2606_v47 }
 0xbe9   :  { %2607 = vrcp.f32 %v682_v48 }
 0xbf3   :  { %v2608_v49 = vpop.eup %2607 }
 0xbf4   :  { %v686_v52 = vmul.f32 %v2608_v49, %v593_v36 }
 0xc57   :  { %v689_v50 = vpop.permute.xlu0 %688 }
 0xc58   :  { %v691_v51 = vmul.f32 %v2608_v49, %v689_v50  ;;  %v1173_v50 = vld [vmem:[%s3119_s5] sm:$0xff] }
 0xc5a   :  { %693 = vrot.lane.b32.xlu1 %v691_v51, %s2703_s3  ;;  %v1174_v51 = vld [vmem:[%s3119_s5 + $0x8] sm:$0xff] }
 0xccc   :  { %v694_v53 = vpop.permute.xlu1 %693 }
 0xccd   :  { %v696_v54 = vadd.f32 %v694_v53, %v686_v52  ;;  %v2958_v52 = vpack.c.bf16 %v1174_v51, %v1173_v50  ;;  %v1175_v53 = vld [vmem:[%s3119_s5 + $0x10] sm:$0xff] }
 0xccf   :  { %2609 = vtanh.f32 %v696_v54 }
 0xcd9   :  { %v2610_v55 = vpop.eup %2609 }
 0xcda   :  { %699 = vrot.lane.b32.xlu0 %v2610_v55, %s2702_s25 }
 0xd4c   :  { %v700_v56 = vpop.permute.xlu0 %699 }
 0xd4d   :  { %v702_v57 = vmul.f32 %v2608_v49, %v700_v56 }
 0xd4f   :  { %704 = vrot.lane.b32.xlu1 %v702_v57, %s2703_s3 }
 0xdc1   :  { %v705_v58 = vpop.permute.xlu1 %704 }
 0xdc2   :  { %707 = vst.msk [vmem:[#allocation3 + $0x20] sm:$0xff] %vm192_vm2, %v705_v58  ;;  %2309 = vmatmul.mubr.msk.f32.vlgmr.msra.gmra.mrb[6].mxu1 %vm192_vm2, %v705_v58 }
 0xdc3   :  { %2500 = vmatpush3.bf16.msra.mxu1 %v2772_v8  ;;  %2330 = vmatprep.mubr.msk.f32.mxu1 %vm2700_vm1, %v2701_v4 }
 0xdc4   :  { %2501 = vmatprep.subr.bf16.mxu1 %v2699_v0 }
 0xdc7   :  { %2503 = vmatpush3.bf16.msra.mxu1 %v2785_v12 }
 0xdc8   :  { %2512 = vmatprep.subr.bf16.mxu1 %v2699_v0 }
 0xdc9   :  { %v1021_v28 = vld [vmem:[#allocation3 + $0x20] sm:$0xff] }
 0xe95   :  { %v777_v63 = vpop.f32.mrb[6].mxu1 }
 0xe96   :  { %v781_v1 = vadd.f32 %v777_v63, %v166_v60  ;;  %v2310_v2 = vpop.f32.mrb[7].mxu1  ;;  %v176_v63 = vadd.f32 %v2856_v61, %v2806_v13 }
 0xe98   :  { %2611 = vtanh.f32 %v781_v1  ;;  %v2091_v8 = vmul.f32 -1.442695, %v781_v1 }
 0xe9a   :  { %2613 = vpow2.f32 %v2091_v8  ;;  %v2994_v8 = vld [vmem:[%s3120_s6] ss:$0 sm:$0xff] }
 0xea2   :  { %v2612_v3 = vpop.eup %2611 }
 0xea3   :  { %791 = vrot.lane.b32.xlu0 %v2612_v3, %s2702_s25 }
 0xea4   :  { %v2614_v5 = vpop.eup %2613 }
 0xea5   :  { %v785_v6 = vadd.f32 1.0, %v2614_v5 }
 0xea7   :  { %2615 = vrcp.f32 %v785_v6 }
 0xeb1   :  { %v2616_v7 = vpop.eup %2615 }
 0xeb2   :  { %v789_v10 = vmul.f32 %v2616_v7, %v696_v54  ;;  %v1176_v54 = vld [vmem:[%s3119_s5 + $0x18] sm:$0xff] }
 0xeb3   :  { %v2968_v55 = vpack.c.bf16 %v1176_v54, %v1175_v53 }
 0xf15   :  { %v792_v9 = vpop.permute.xlu0 %791 }
 0xf16   :  { %v794_v12 = vmul.f32 %v2616_v7, %v792_v9 }
 0xf18   :  { %796 = vrot.lane.b32.xlu1 %v794_v12, %s2703_s3 }
 0xf8a   :  { %v797_v11 = vpop.permute.xlu1 %796 }
 0xf8b   :  { %v799_v59 = vadd.f32 %v797_v11, %v789_v10 }
 0xf8d   :  { %2617 = vtanh.f32 %v799_v59 }
 0xf97   :  { %v2618_v17 = vpop.eup %2617 }
 0xf98   :  { %802 = vrot.lane.b32.xlu0 %v2618_v17, %s2702_s25 }
0x100a   :  { %v803_v18 = vpop.permute.xlu0 %802 }
0x100b   :  { %v805_v19 = vmul.f32 %v2616_v7, %v803_v18 }
0x100d   :  { %807 = vrot.lane.b32.xlu1 %v805_v19, %s2703_s3 }
0x107f   :  { %v808_v23 = vpop.permute.xlu1 %807 }
0x1080   :  { %810 = vst.msk [vmem:[#allocation3 + $0x28] sm:$0xff] %vm192_vm2, %v808_v23  ;;  %2320 = vmatmul.mubr.msk.f32.vlgmr.msra.gmra.mrb[12].mxu0 %vm192_vm2, %v808_v23 }
0x1081   :  { %2507 = vmatpush3.bf16.msra.mxu0 %v2504_v16  ;;  %2341 = vmatprep.mubr.msk.f32.mxu0 %vm192_vm2, %v1017_v24 }
0x1082   :  { %2509 = vmatprep.subr.bf16.mxu0 %v2508_v22 }
0x1085   :  { %2511 = vmatpush3.bf16.msra.mxu0 %v2508_v22 }
0x1086   :  { %2524 = vmatprep.subr.bf16.mxu0 %v2699_v0 }
0x1087   :  { %v1022_v29 = vld [vmem:[#allocation3 + $0x28] sm:$0xff] }
0x1088   :  { %2342 = vmatmul.mubr.msk.f32.vlgmr.msra.gmra.mrb[14].mxu0 %vm192_vm2, %v1018_v25 }
0x1089   :  { %2344 = vmatprep.mubr.msk.f32.mxu0 %vm192_vm2, %v1019_v26  ;;  %2526 = vmatpush3.bf16.msra.mxu0 %v2958_v52 }
0x108a   :  { %2527 = vmatprep.subr.bf16.mxu0 %v2699_v0 }
0x108c   :  { %2345 = vmatmul.mubr.msk.f32.gmra.mrb[16].mxu0 %vm192_vm2, %v1020_v27 }
0x108d   :  { %2347 = vmatprep.mubr.msk.f32.mxu0 %vm192_vm2, %v1021_v28  ;;  %2529 = vmatpush3.bf16.msra.mxu0 %v2968_v55 }
0x108e   :  { %2536 = vmatprep.subr.bf16.mxu0 %v2699_v0 }
0x1090   :  { %2348 = vmatmul.mubr.msk.f32.gmra.mrb[18].mxu0 %vm192_vm2, %v1022_v29 }
0x1153   :  { %v880_v31 = vpop.f32.mrb[12].mxu0 }
0x1154   :  { %v884_v32 = vadd.f32 %v880_v31, %v171_v30  ;;  %v2321_v33 = vpop.f32.mrb[13].mxu0 }
0x1156   :  { %2619 = vtanh.f32 %v884_v32  ;;  %v2093_v41 = vmul.f32 -1.442695, %v884_v32 }
0x1158   :  { %2621 = vpow2.f32 %v2093_v41 }
0x115b   :  { %v2936_v34 = vpop.f32.mrb[14].mxu0 }
0x115c   :  { %v1126_v35 = vpop.f32.mrb[15].mxu0 }
0x115d   :  { %v1127_v5 = vadd.f32 %v2994_v8, %v1126_v35 }
0x115f   :  { %v2938_v36 = vpop.f32.mrb[16].mxu0 }
0x1160   :  { %v2620_v37 = vpop.eup %2619  ;;  %v2940_v38 = vpop.f32.mrb[17].mxu0 }
0x1161   :  { %894 = vrot.lane.b32.xlu0 %v2620_v37, %s2702_s25  ;;  %v1132_v37 = vadd.f32 %v2936_v34, %v2994_v8 }
0x1162   :  { %v2622_v62 = vpop.eup %2621 }
0x1163   :  { %v2943_v39 = vpop.f32.mrb[18].mxu0  ;;  %v888_v42 = vadd.f32 1.0, %v2622_v62 }
0x1164   :  { %v2945_v40 = vpop.f32.mrb[19].mxu0 }
0x1165   :  { %2623 = vrcp.f32 %v888_v42 }
0x116f   :  { %v2624_v43 = vpop.eup %2623 }
0x1170   :  { %v892_v46 = vmul.f32 %v2624_v43, %v799_v59 }
0x11d3   :  { %v895_v44 = vpop.permute.xlu0 %894 }
0x11d4   :  { %v897_v45 = vmul.f32 %v2624_v43, %v895_v44 }
0x11d6   :  { %899 = vrot.lane.b32.xlu1 %v897_v45, %s2703_s3 }
0x1248   :  { %v900_v47 = vpop.permute.xlu1 %899 }
0x1249   :  { %v2948_v48 = vadd.f32 %v900_v47, %v892_v46 }
0x124b   :  { %2625 = vtanh.f32 %v2948_v48 }
0x1255   :  { %v2626_v49 = vpop.eup %2625 }
0x1256   :  { %905 = vrot.lane.b32.xlu0 %v2626_v49, %s2702_s25 }
0x12c8   :  { %v906_v56 = vpop.permute.xlu0 %905 }
0x12c9   :  { %v908_v57 = vmul.f32 %v2624_v43, %v906_v56 }
0x12cb   :  { %910 = vrot.lane.b32.xlu1 %v908_v57, %s2703_s3 }
0x133d   :  { %v911_v58 = vpop.permute.xlu1 %910 }
0x133e   :  { %913 = vst.msk [vmem:[#allocation3 + $0x30] sm:$0xff] %vm192_vm2, %v911_v58  ;;  %2331 = vmatmul.mubr.msk.f32.vlgmr.msra.gmra.mrb[8].mxu1 %vm192_vm2, %v911_v58 }
0x133f   :  { %2514 = vmatpush3.bf16.msra.mxu1 %v2958_v52  ;;  %2361 = vmatprep.mubr.msk.f32.mxu1 %vm2700_vm1, %v2701_v4 }
0x1340   :  { %2515 = vmatprep.subr.bf16.mxu1 %v2699_v0 }
0x1343   :  { %2517 = vmatpush3.bf16.msra.mxu1 %v2968_v55 }
0x1344   :  { %2518 = vmatprep.subr.bf16.mxu1 %v2699_v0 }
0x1345   :  { %v1023_v60 = vld [vmem:[#allocation3 + $0x30] sm:$0xff] }
0x1346   :  { %2362 = vmatmul.mubr.f32.vlgmr.msra.gmra.mrb[10].mxu1 %v2701_v4  ;;  %2350 = vmatprep.mubr.msk.f32.mxu0 %vm192_vm2, %v1023_v60 }
0x1347   :  { %2520 = vmatpush3.bf16.msra.mxu1 %v2958_v52  ;;  %2372 = vmatprep.mubr.msk.f32.mxu1 %vm2700_vm1, %v2701_v4 }
0x1348   :  { %2521 = vmatprep.subr.bf16.mxu1 %v2699_v0 }
0x134b   :  { %2523 = vmatpush3.bf16.msra.mxu1 %v2968_v55 }
0x134c   :  { %2530 = vmatprep.subr.bf16.mxu1 %v2699_v0 }
0x1411   :  { %v983_v1 = vpop.f32.mrb[8].mxu1 }
0x1412   :  { %v987_v2 = vadd.f32 %v983_v1, %v176_v63  ;;  %v2332_v3 = vpop.f32.mrb[9].mxu1 }
0x1414   :  { %v2095_v20 = vmul.f32 -1.442695, %v987_v2 }
0x1419   :  { %v1244_v6 = vpop.f32.mrb[10].mxu1 }
0x141a   :  { %v1248_v7 = vadd.f32 %v1244_v6, %v1127_v5  ;;  %v2363_v9 = vpop.f32.mrb[11].mxu1 }
0x141c   :  { %2627 = vtanh.f32 %v1248_v7  ;;  %v2105_v10 = vmul.f32 -1.442695, %v1248_v7 }
0x141e   :  { %2629 = vpow2.f32 %v2105_v10 }
0x1426   :  { %v2628_v12 = vpop.eup %2627 }
0x1427   :  { %1258 = vrot.lane.b32.xlu0 %v2628_v12, %s2702_s25 }
0x1428   :  { %v2630_v13 = vpop.eup %2629 }
0x1429   :  { %v1252_v61 = vadd.f32 1.0, %v2630_v13 }
0x142b   :  { %2631 = vrcp.f32 %v1252_v61 }
0x1435   :  { %v2632_v11 = vpop.eup %2631 }
0x1436   :  { %v1256_v15 = vmul.f32 0.0, %v2632_v11 }
0x1499   :  { %v1259_v59 = vpop.permute.xlu0 %1258 }
0x149a   :  { %v1261_v14 = vmul.f32 %v2632_v11, %v1259_v59 }
0x149c   :  { %1263 = vrot.lane.b32.xlu1 %v1261_v14, %s2703_s3 }
0x150e   :  { %v1264_v16 = vpop.permute.xlu1 %1263 }
0x150f   :  { %v1266_v17 = vadd.f32 %v1264_v16, %v1256_v15 }
0x1511   :  { %2633 = vtanh.f32 %v1266_v17 }
0x1512   :  { %2635 = vtanh.f32 %v987_v2  ;;  %v1137_v2 = vadd.f32 %v2994_v8, %v2940_v38 }
0x1513   :  { %2637 = vpow2.f32 %v2095_v20 }
0x151b   :  { %v2634_v18 = vpop.eup %2633 }
0x151c   :  { %1269 = vrot.lane.b32.xlu0 %v2634_v18, %s2702_s25  ;;  %v2636_v19 = vpop.eup %2635 }
0x151d   :  { %v2638_v21 = vpop.eup %2637 }
0x151e   :  { %v991_v22 = vadd.f32 1.0, %v2638_v21 }
0x1520   :  { %997 = vrot.lane.b32.xlu0 %v2636_v19, %s2702_s25  ;;  %2639 = vrcp.f32 %v991_v22  ;;  %v1142_v19 = vadd.f32 %v2938_v36, %v2994_v8 }
0x152a   :  { %v2640_v25 = vpop.eup %2639 }
0x152b   :  { %v995_v29 = vmul.f32 %v2640_v25, %v2948_v48 }
0x158e   :  { %v1270_v23 = vpop.permute.xlu0 %1269 }
0x158f   :  { %v1272_v24 = vmul.f32 %v2632_v11, %v1270_v23 }
0x1591   :  { %1275 = vrot.lane.b32.xlu1 %v1272_v24, %s2703_s3 }
0x1592   :  { %v998_v26 = vpop.permute.xlu0 %997 }
0x1593   :  { %v1000_v27 = vmul.f32 %v2640_v25, %v998_v26 }
0x1595   :  { %1002 = vrot.lane.b32.xlu0 %v1000_v27, %s2703_s3 }
0x1603   :  { %v1276_v28 = vpop.permute.xlu1 %1275 }
0x1604   :  { %2373 = vmatmul.mubr.msk.f32.vlgmr.msra.gmra.mrb[12].mxu1 %vm192_vm2, %v1276_v28 }
0x1605   :  { %2532 = vmatpush3.bf16.msra.mxu1 %v2958_v52  ;;  %2394 = vmatprep.mubr.msk.f32.mxu1 %vm2700_vm1, %v2701_v4 }
0x1606   :  { %2533 = vmatprep.subr.bf16.mxu1 %v2699_v0 }
0x1607   :  { %v1003_v30 = vpop.permute.xlu0 %1002 }
0x1608   :  { %v1005_v31 = vadd.f32 %v1003_v30, %v995_v29 }
0x1609   :  { %2535 = vmatpush3.bf16.msra.mxu1 %v2968_v55 }
0x160a   :  { %2641 = vtanh.f32 %v1005_v31  ;;  %2542 = vmatprep.subr.bf16.mxu1 %v2699_v0 }
0x1614   :  { %v2642_v32 = vpop.eup %2641 }
0x1615   :  { %1008 = vrot.lane.b32.xlu0 %v2642_v32, %s2702_s25 }
0x1687   :  { %v1009_v33 = vpop.permute.xlu0 %1008 }
0x1688   :  { %v1011_v35 = vmul.f32 %v2640_v25, %v1009_v33 }
0x168a   :  { %1013 = vrot.lane.b32.xlu0 %v1011_v35, %s2703_s3 }
0x16d7   :  { %v1345_v41 = vpop.f32.mrb[12].mxu1 }
0x16d8   :  { %v1349_v62 = vadd.f32 %v1345_v41, %v1132_v37  ;;  %v2374_v42 = vpop.f32.mrb[13].mxu1  ;;  %v1147_v41 = vadd.f32 %v2994_v8, %v2945_v40 }
0x16da   :  { %2643 = vtanh.f32 %v1349_v62  ;;  %v2107_v46 = vmul.f32 -1.442695, %v1349_v62 }
0x16dc   :  { %2645 = vpow2.f32 %v2107_v46 }
0x16e4   :  { %v2644_v43 = vpop.eup %2643 }
0x16e5   :  { %1359 = vrot.lane.b32.xlu1 %v2644_v43, %s2702_s25 }
0x16e6   :  { %v2646_v47 = vpop.eup %2645 }
0x16e7   :  { %v1353_v34 = vadd.f32 1.0, %v2646_v47 }
0x16e9   :  { %2647 = vrcp.f32 %v1353_v34 }
0x16f3   :  { %v2648_v48 = vpop.eup %2647 }
0x16f4   :  { %v1357_v51 = vmul.f32 %v2648_v48, %v1266_v17 }
0x16fc   :  { %v1014_v44 = vpop.permute.xlu0 %1013 }
0x16fd   :  { %1016 = vst.msk [vmem:[#allocation3 + $0x38] sm:$0xff] %vm192_vm2, %v1014_v44 }
0x1704   :  { %v1024_v45 = vld [vmem:[#allocation3 + $0x38] sm:$0xff] }
0x1705   :  { %2351 = vmatmul.mubr.msk.f32.gmra.mrb[20].mxu0 %vm192_vm2, %v1024_v45 }
0x1706   :  { %2383 = vmatprep.mubr.msk.f32.mxu0 %vm2700_vm1, %v2701_v4 }
0x1757   :  { %v1360_v49 = vpop.permute.xlu1 %1359 }
0x1758   :  { %v1362_v50 = vmul.f32 %v2648_v48, %v1360_v49 }
0x175a   :  { %1364 = vrot.lane.b32.xlu1 %v1362_v50, %s2703_s3 }
0x17cc   :  { %v1365_v53 = vpop.permute.xlu1 %1364 }
0x17cd   :  { %v1367_v54 = vadd.f32 %v1365_v53, %v1357_v51 }
0x17cf   :  { %2649 = vtanh.f32 %v1367_v54 }
0x17d8   :  { %v3021_v56 = vpop.f32.mrb[20].mxu0 }
0x17d9   :  { %v2650_v57 = vpop.eup %2649  ;;  %v3023_v58 = vpop.f32.mrb[21].mxu0 }
0x17da   :  { %1370 = vrot.lane.b32.xlu1 %v2650_v57, %s2702_s25 }
0x184c   :  { %v1371_v60 = vpop.permute.xlu1 %1370 }
0x184d   :  { %v1373_v63 = vmul.f32 %v2648_v48, %v1371_v60 }
0x184f   :  { %1376 = vrot.lane.b32.xlu1 %v1373_v63, %s2703_s3  ;;  %v1152_v63 = vadd.f32 %v2943_v39, %v2994_v8 }
0x18c1   :  { %v1377_v1 = vpop.permute.xlu1 %1376 }
0x18c2   :  { %2384 = vmatmul.mubr.msk.f32.vlgmr.msra.gmra.mrb[22].mxu0 %vm192_vm2, %v1377_v1 }
0x18c3   :  { %2538 = vmatpush3.bf16.msra.mxu0 %v2958_v52  ;;  %2405 = vmatprep.mubr.msk.f32.mxu0 %vm2700_vm1, %v2701_v4 }
0x18c4   :  { %2539 = vmatprep.subr.bf16.mxu0 %v2699_v0 }
0x18c7   :  { %2541 = vmatpush3.bf16.msra.mxu0 %v2968_v55 }
0x18c8   :  { %2548 = vmatprep.subr.bf16.mxu0 %v2699_v0 }
0x1995   :  { %v1446_v3 = vpop.f32.mrb[22].mxu0 }
0x1996   :  { %v1450_v5 = vadd.f32 %v1446_v3, %v1137_v2  ;;  %v2385_v6 = vpop.f32.mrb[23].mxu0 }
0x1998   :  { %2651 = vtanh.f32 %v1450_v5  ;;  %v2109_v9 = vmul.f32 -1.442695, %v1450_v5 }
0x199a   :  { %2653 = vpow2.f32 %v2109_v9 }
0x19a2   :  { %v2652_v7 = vpop.eup %2651 }
0x19a3   :  { %1460 = vrot.lane.b32.xlu0 %v2652_v7, %s2702_s25 }
0x19a4   :  { %v2654_v12 = vpop.eup %2653 }
0x19a5   :  { %v1454_v10 = vadd.f32 1.0, %v2654_v12 }
0x19a7   :  { %2655 = vrcp.f32 %v1454_v10 }
0x19b1   :  { %v2656_v13 = vpop.eup %2655 }
0x19b2   :  { %v1458_v59 = vmul.f32 %v2656_v13, %v1367_v54 }
0x1a15   :  { %v1461_v61 = vpop.permute.xlu0 %1460 }
0x1a16   :  { %v1463_v11 = vmul.f32 %v2656_v13, %v1461_v61 }
0x1a18   :  { %1465 = vrot.lane.b32.xlu1 %v1463_v11, %s2703_s3 }
0x1a8a   :  { %v1466_v14 = vpop.permute.xlu1 %1465 }
0x1a8b   :  { %v1468_v38 = vadd.f32 %v1466_v14, %v1458_v59 }
0x1a8d   :  { %2657 = vtanh.f32 %v1468_v38 }
0x1a97   :  { %v2658_v15 = vpop.eup %2657 }
0x1a98   :  { %1471 = vrot.lane.b32.xlu0 %v2658_v15, %s2702_s25 }
0x1b0a   :  { %v1472_v16 = vpop.permute.xlu0 %1471 }
0x1b0b   :  { %v1474_v17 = vmul.f32 %v2656_v13, %v1472_v16 }
0x1b0d   :  { %1477 = vrot.lane.b32.xlu1 %v1474_v17, %s2703_s3 }
0x1b7f   :  { %v1478_v18 = vpop.permute.xlu1 %1477 }
0x1b80   :  { %2395 = vmatmul.mubr.msk.f32.vlgmr.msra.gmra.mrb[14].mxu1 %vm192_vm2, %v1478_v18 }
0x1b81   :  { %2544 = vmatpush3.bf16.msra.mxu1 %v2958_v52  ;;  %2416 = vmatprep.mubr.msk.f32.mxu1 %vm2700_vm1, %v2701_v4 }
0x1b82   :  { %2545 = vmatprep.subr.bf16.mxu1 %v2699_v0 }
0x1b85   :  { %2547 = vmatpush3.bf16.msra.mxu1 %v2968_v55 }
0x1b86   :  { %2554 = vmatprep.subr.bf16.mxu1 %v2699_v0 }
0x1c53   :  { %v1547_v20 = vpop.f32.mrb[14].mxu1 }
0x1c54   :  { %v1551_v21 = vadd.f32 %v1547_v20, %v1142_v19  ;;  %v2396_v22 = vpop.f32.mrb[15].mxu1 }
0x1c56   :  { %2659 = vtanh.f32 %v1551_v21  ;;  %v2111_v24 = vmul.f32 -1.442695, %v1551_v21 }
0x1c58   :  { %2661 = vpow2.f32 %v2111_v24 }
0x1c60   :  { %v2660_v23 = vpop.eup %2659 }
0x1c61   :  { %1561 = vrot.lane.b32.xlu0 %v2660_v23, %s2702_s25 }
0x1c62   :  { %v2662_v25 = vpop.eup %2661 }
0x1c63   :  { %v1555_v26 = vadd.f32 1.0, %v2662_v25 }
0x1c65   :  { %2663 = vrcp.f32 %v1555_v26 }
0x1c6f   :  { %v2664_v27 = vpop.eup %2663 }
0x1c70   :  { %v1559_v30 = vmul.f32 %v2664_v27, %v1468_v38  ;;  %v1157_v38 = vadd.f32 %v2994_v8, %v3023_v58 }
0x1cd3   :  { %v1562_v28 = vpop.permute.xlu0 %1561 }
0x1cd4   :  { %v1564_v29 = vmul.f32 %v2664_v27, %v1562_v28 }
0x1cd6   :  { %1566 = vrot.lane.b32.xlu1 %v1564_v29, %s2703_s3 }
0x1d48   :  { %v1567_v31 = vpop.permute.xlu1 %1566 }
0x1d49   :  { %v1569_v36 = vadd.f32 %v1567_v31, %v1559_v30  ;;  %v1162_v30 = vadd.f32 %v3021_v56, %v2994_v8  ;;  %v1980_v56 = vld [vmem:[%s3121_s7] sm:$0xff] }
0x1d4b   :  { %2665 = vtanh.f32 %v1569_v36 }
0x1d55   :  { %v2666_v32 = vpop.eup %2665 }
0x1d56   :  { %1572 = vrot.lane.b32.xlu0 %v2666_v32, %s2702_s25 }
0x1dc8   :  { %v1573_v33 = vpop.permute.xlu0 %1572 }
0x1dc9   :  { %v1575_v35 = vmul.f32 %v2664_v27, %v1573_v33 }
0x1dcb   :  { %1578 = vrot.lane.b32.xlu1 %v1575_v35, %s2703_s3 }
0x1e3d   :  { %v1579_v37 = vpop.permute.xlu1 %1578 }
0x1e3e   :  { %2406 = vmatmul.mubr.msk.f32.vlgmr.msra.gmra.mrb[24].mxu0 %vm192_vm2, %v1579_v37 }
0x1e3f   :  { %2550 = vmatpush3.bf16.msra.mxu0 %v2958_v52  ;;  %2427 = vmatprep.mubr.msk.f32.mxu0 %vm2700_vm1, %v2701_v4 }
0x1e40   :  { %2551 = vmatprep.subr.bf16.mxu0 %v2699_v0 }
0x1e43   :  { %2553 = vmatpush3.bf16.msra.mxu0 %v2968_v55 }
0x1e44   :  { %2560 = vmatprep.subr.bf16.mxu0 %v2699_v0 }
0x1f11   :  { %v1648_v62 = vpop.f32.mrb[24].mxu0 }
0x1f12   :  { %v1652_v42 = vadd.f32 %v1648_v62, %v1147_v41  ;;  %v2407_v43 = vpop.f32.mrb[25].mxu0 }
0x1f14   :  { %2667 = vtanh.f32 %v1652_v42  ;;  %v2113_v45 = vmul.f32 -1.442695, %v1652_v42 }
0x1f16   :  { %2669 = vpow2.f32 %v2113_v45 }
0x1f1e   :  { %v2668_v44 = vpop.eup %2667 }
0x1f1f   :  { %1662 = vrot.lane.b32.xlu0 %v2668_v44, %s2702_s25 }
0x1f20   :  { %v2670_v46 = vpop.eup %2669 }
0x1f21   :  { %v1656_v47 = vadd.f32 1.0, %v2670_v46  ;;  %v1981_v46 = vld [vmem:[%s3121_s7 + $0x8] sm:$0xff] }
0x1f23   :  { %2671 = vrcp.f32 %v1656_v47  ;;  %v1982_v47 = vld [vmem:[%s3121_s7 + $0x10] sm:$0xff] }
0x1f2d   :  { %v2672_v34 = vpop.eup %2671 }
0x1f2e   :  { %v1660_v50 = vmul.f32 %v2672_v34, %v1569_v36 }
0x1f91   :  { %v1663_v48 = vpop.permute.xlu0 %1662 }
0x1f92   :  { %v1665_v49 = vmul.f32 %v2672_v34, %v1663_v48  ;;  %v1983_v48 = vld [vmem:[%s3121_s7 + $0x18] sm:$0xff] }
0x1f94   :  { %1667 = vrot.lane.b32.xlu1 %v1665_v49, %s2703_s3  ;;  %v2564_v49 = vpack.c.bf16 %v1983_v48, %v1982_v47 }
0x2006   :  { %v1668_v51 = vpop.permute.xlu1 %1667 }
0x2007   :  { %v1670_v40 = vadd.f32 %v1668_v51, %v1660_v50 }
0x2009   :  { %2673 = vtanh.f32 %v1670_v40 }
0x2013   :  { %v2674_v53 = vpop.eup %2673 }
0x2014   :  { %1673 = vrot.lane.b32.xlu0 %v2674_v53, %s2702_s25 }
0x2086   :  { %v1674_v54 = vpop.permute.xlu0 %1673 }
0x2087   :  { %v1676_v57 = vmul.f32 %v2672_v34, %v1674_v54  ;;  %v2561_v34 = vpack.c.bf16 %v1981_v46, %v1980_v56  ;;  %v2120_v54 = vld [vmem:[%s3122_s8] ss:$0 sm:$0xff] }
0x2089   :  { %1679 = vrot.lane.b32.xlu1 %v1676_v57, %s2703_s3 }
0x20fb   :  { %v1680_v60 = vpop.permute.xlu1 %1679 }
0x20fc   :  { %2417 = vmatmul.mubr.msk.f32.vlgmr.msra.gmra.mrb[16].mxu1 %vm192_vm2, %v1680_v60 }
0x20fd   :  { %2556 = vmatpush3.bf16.msra.mxu1 %v2958_v52  ;;  %2438 = vmatprep.mubr.msk.f32.mxu1 %vm2700_vm1, %v2701_v4 }
0x20fe   :  { %2557 = vmatprep.subr.bf16.mxu1 %v2699_v0 }
0x2101   :  { %2559 = vmatpush3.bf16.msra.mxu1 %v2968_v55 }
0x21cf   :  { %v1749_v1 = vpop.f32.mrb[16].mxu1 }
0x21d0   :  { %v1753_v2 = vadd.f32 %v1749_v1, %v1152_v63  ;;  %v2418_v3 = vpop.f32.mrb[17].mxu1 }
0x21d2   :  { %2675 = vtanh.f32 %v1753_v2  ;;  %v2115_v6 = vmul.f32 -1.442695, %v1753_v2 }
0x21d4   :  { %2677 = vpow2.f32 %v2115_v6 }
0x21dc   :  { %v2676_v5 = vpop.eup %2675 }
0x21dd   :  { %1763 = vrot.lane.b32.xlu0 %v2676_v5, %s2702_s25 }
0x21de   :  { %v2678_v52 = vpop.eup %2677 }
0x21df   :  { %v1757_v7 = vadd.f32 1.0, %v2678_v52 }
0x21e1   :  { %2679 = vrcp.f32 %v1757_v7 }
0x21eb   :  { %v2680_v9 = vpop.eup %2679 }
0x21ec   :  { %v1761_v55 = vmul.f32 %v2680_v9, %v1670_v40 }
0x224f   :  { %v1764_v12 = vpop.permute.xlu0 %1763 }
0x2250   :  { %v1766_v10 = vmul.f32 %v2680_v9, %v1764_v12 }
0x2252   :  { %1768 = vrot.lane.b32.xlu1 %v1766_v10, %s2703_s3 }
0x22c4   :  { %v1769_v13 = vpop.permute.xlu1 %1768 }
0x22c5   :  { %v1771_v39 = vadd.f32 %v1769_v13, %v1761_v55 }
0x22c7   :  { %2681 = vtanh.f32 %v1771_v39 }
0x22d1   :  { %v2682_v61 = vpop.eup %2681 }
0x22d2   :  { %1774 = vrot.lane.b32.xlu0 %v2682_v61, %s2702_s25 }
0x2344   :  { %v1775_v11 = vpop.permute.xlu0 %1774 }
0x2345   :  { %v1777_v59 = vmul.f32 %v2680_v9, %v1775_v11 }
0x2347   :  { %1780 = vrot.lane.b32.xlu1 %v1777_v59, %s2703_s3 }
0x23b9   :  { %v1781_v14 = vpop.permute.xlu1 %1780 }
0x23ba   :  { %2428 = vmatmul.mubr.msk.f32.vlgmr.msra.gmra.mrb[26].mxu0 %vm192_vm2, %v1781_v14 }
0x23bb   :  { %2449 = vmatprep.mubr.msk.f32.mxu0 %vm2700_vm1, %v2701_v4  ;;  %2562 = vmatpush3.bf16.msra.mxu0 %v2561_v34 }
0x23bc   :  { %2563 = vmatprep.subr.bf16.mxu0 %v2699_v0 }
0x23bf   :  { %2565 = vmatpush3.bf16.msra.mxu0 %v2564_v49 }
0x248d   :  { %v1850_v15 = vpop.f32.mrb[26].mxu0 }
0x248e   :  { %v1854_v16 = vadd.f32 %v1850_v15, %v1157_v38  ;;  %v2429_v17 = vpop.f32.mrb[27].mxu0 }
0x2490   :  { %2683 = vtanh.f32 %v1854_v16  ;;  %v2117_v19 = vmul.f32 -1.442695, %v1854_v16 }
0x2492   :  { %2685 = vpow2.f32 %v2117_v19 }
0x249a   :  { %v2684_v18 = vpop.eup %2683 }
0x249b   :  { %1864 = vrot.lane.b32.xlu0 %v2684_v18, %s2702_s25 }
0x249c   :  { %v2686_v20 = vpop.eup %2685 }
0x249d   :  { %v1858_v21 = vadd.f32 1.0, %v2686_v20 }
0x249f   :  { %2687 = vrcp.f32 %v1858_v21 }
0x24a9   :  { %v2688_v22 = vpop.eup %2687 }
0x24aa   :  { %v1862_v4 = vmul.f32 %v2688_v22, %v1771_v39 }
0x250d   :  { %v1865_v23 = vpop.permute.xlu0 %1864 }
0x250e   :  { %v1867_v24 = vmul.f32 %v2688_v22, %v1865_v23 }
0x2510   :  { %1869 = vrot.lane.b32.xlu1 %v1867_v24, %s2703_s3 }
0x2582   :  { %v1870_v25 = vpop.permute.xlu1 %1869 }
0x2583   :  { %v1872_v58 = vadd.f32 %v1870_v25, %v1862_v4 }
0x2585   :  { %2689 = vtanh.f32 %v1872_v58 }
0x258f   :  { %v2690_v26 = vpop.eup %2689 }
0x2590   :  { %1875 = vrot.lane.b32.xlu0 %v2690_v26, %s2702_s25 }
0x2602   :  { %v1876_v27 = vpop.permute.xlu0 %1875 }
0x2603   :  { %v1878_v28 = vmul.f32 %v2688_v22, %v1876_v27 }
0x2605   :  { %1881 = vrot.lane.b32.xlu1 %v1878_v28, %s2703_s3 }
0x2677   :  { %v1882_v29 = vpop.permute.xlu1 %1881 }
0x2678   :  { %2439 = vmatmul.mubr.msk.f32.vlgmr.msra.gmra.mrb[18].mxu1 %vm192_vm2, %v1882_v29 }
0x274b   :  { %v1951_v31 = vpop.f32.mrb[18].mxu1 }
0x274c   :  { %v1955_v36 = vadd.f32 %v1951_v31, %v1162_v30  ;;  %v2440_v32 = vpop.f32.mrb[19].mxu1 }
0x274e   :  { %2691 = vtanh.f32 %v1955_v36  ;;  %v2119_v35 = vmul.f32 -1.442695, %v1955_v36 }
0x2750   :  { %2693 = vpow2.f32 %v2119_v35 }
0x2758   :  { %v2692_v33 = vpop.eup %2691 }
0x2759   :  { %1965 = vrot.lane.b32.xlu0 %v2692_v33, %s2702_s25 }
0x275a   :  { %v2694_v37 = vpop.eup %2693 }
0x275b   :  { %v1959_v41 = vadd.f32 1.0, %v2694_v37 }
0x275d   :  { %2695 = vrcp.f32 %v1959_v41 }
0x2767   :  { %v2696_v62 = vpop.eup %2695 }
0x2768   :  { %v1963_v44 = vmul.f32 %v2696_v62, %v1872_v58 }
0x27cb   :  { %v1966_v42 = vpop.permute.xlu0 %1965 }
0x27cc   :  { %v1968_v43 = vmul.f32 %v2696_v62, %v1966_v42 }
0x27ce   :  { %1970 = vrot.lane.b32.xlu1 %v1968_v43, %s2703_s3 }
0x2840   :  { %v1971_v45 = vpop.permute.xlu1 %1970 }
0x2841   :  { %v1973_v8 = vadd.f32 %v1971_v45, %v1963_v44 }
0x2843   :  { %2697 = vtanh.f32 %v1973_v8 }
0x284d   :  { %v2698_v50 = vpop.eup %2697 }
0x284e   :  { %1976 = vrot.lane.b32.xlu0 %v2698_v50, %s2702_s25 }
0x28c0   :  { %v1977_v51 = vpop.permute.xlu0 %1976 }
0x28c1   :  { %v1979_v40 = vmul.f32 %v2696_v62, %v1977_v51 }
0x28c3   :  { %1992 = vrot.lane.b32.xlu1 %v1979_v40, %s2703_s3 }
0x2935   :  { %v1993_v53 = vpop.permute.xlu1 %1992 }
0x2936   :  { %2450 = vmatmul.mubr.msk.f32.vlgmr.msra.gmra.mrb[28].mxu0 %vm192_vm2, %v1993_v53 }
0x2a09   :  { %v2062_v57 = vpop.f32.mrb[28].mxu0 }
0x2a0a   :  { %v2063_v60 = vadd.f32 %v2120_v54, %v2062_v57  ;;  %v2451_v63 = vpop.f32.mrb[29].mxu0 }
0x2a0c   :  { %2067 = vst.msk [vmem:[%s3123_s9] sm:$0xff] %vm2066_vm3, %v2063_v60 }

</bundles_post_ra>
